<compile_context>
chip_gen: v7x
topology: tpu7x:2x2x1
jax: 0.10.0
libtpu: 0.0.40
codegen_flags: <defaults>
</compile_context>

<pallas_src>
import jax
import jax.numpy as jnp
import numpy as np
from jax.experimental import pallas as pl
from jax.experimental.pallas import tpu as pltpu


def _round_up(x, m):
    return (x + m - 1) // m * m


def _nbytes(a):
    return int(a.size) * a.dtype.itemsize


def _vmem_capacity_bytes():
    try:
        return int(pltpu.get_tpu_info().vmem_capacity_bytes)
    except Exception:
        return 64 * 1024 * 1024  # conservative (v7x-sized) fallback


# ----------------------------------------------------------------------------
# Pallas kernel: fused relation-distribution head
#   grid = (row tiles [parallel], P chunks [arbitrary, reduction])
# ----------------------------------------------------------------------------
def _tcar_rel_kernel(ctx_ref, uni_ref, cal_ref,
                     w_post_ref, b_post_ref,
                     w_up_ref, b_up_ref,
                     w_rel_ref, w_ctx_ref, b_tail_ref,
                     out_ref, acc_ref):
    pc = pl.program_id(1)

    @pl.when(pc == 0)
    def _init():
        acc_ref[...] = jnp.zeros_like(acc_ref)

    ctx = ctx_ref[...]                                   # (tn, H_pad) bf16
    uni = uni_ref[...]                                   # (tn, M_pad) bf16

    # post_cat / up_dim heads for this P chunk (MXU, f32 accumulation).
    ctx_gate = jnp.dot(ctx, w_post_ref[...],
                       preferred_element_type=jnp.float32) + b_post_ref[...]
    up = jnp.dot(uni, w_up_ref[...],
                 preferred_element_type=jnp.float32) + b_up_ref[...]

    # Elementwise vision gate stays in f32 (v5e has no bf16 VPU path).
    visual_rep = ctx_gate * up                           # (tn, tp) f32

    # rel_compress contribution of this P chunk, accumulated in f32 (no concat).
    acc_ref[...] += jnp.dot(visual_rep.astype(w_rel_ref.dtype), w_rel_ref[...],
                            preferred_element_type=jnp.float32)

    @pl.when(pc == pl.num_programs(1) - 1)
    def _finalize():
        # + ctx_compress(edge_ctx) + (b_rel + b_ctx) + zs_test_cal
        rel = acc_ref[...] + jnp.dot(ctx, w_ctx_ref[...],
                                     preferred_element_type=jnp.float32)
        out_ref[...] = rel + b_tail_ref[...] + cal_ref[...].astype(jnp.float32)


# ----------------------------------------------------------------------------
# One-time parameter preparation (pad to 128 lanes, bf16 weights, f32 biases)
# ----------------------------------------------------------------------------
def prepare_fused_rel_params(params, *, weight_dtype=jnp.bfloat16):
    H, P = params["w_post"].shape
    M = params["w_up"].shape[0]
    R = params["w_rel"].shape[1]
    H_pad, M_pad, P_pad, R_pad = (_round_up(d, 128) for d in (H, M, P, R))

    def pad2(x, rows, cols):
        return jnp.pad(x, ((0, rows - x.shape[0]), (0, cols - x.shape[1])))

    return {
        "w_post": pad2(params["w_post"], H_pad, P_pad).astype(weight_dtype),
        "b_post": pad2(params["b_post"], 1, P_pad).astype(jnp.float32),
        "w_up":   pad2(params["w_up"], M_pad, P_pad).astype(weight_dtype),
        "b_up":   pad2(params["b_up"], 1, P_pad).astype(jnp.float32),
        "w_rel":  pad2(params["w_rel"], P_pad, R_pad).astype(weight_dtype),
        "w_ctx":  pad2(params["w_ctx"], H_pad, R_pad).astype(weight_dtype),
        "b_tail": pad2(params["b_rel"] + params["b_ctx"], 1, R_pad).astype(jnp.float32),
        "dims": (H, M, P, R),
        "padded": (H_pad, M_pad, P_pad, R_pad),
    }


# ----------------------------------------------------------------------------
# VMEM footprint estimate (used both for tp selection and vmem_limit_bytes)
# ----------------------------------------------------------------------------
def _estimate_vmem(tn, tp, padded, *, grid_p, single_buffer,
                   act_itemsize=2, weight_itemsize=2):
    H_pad, M_pad, P_pad, R_pad = padded
    chunk_buf = 1 if (single_buffer and grid_p == 1) else 2   # streamed when grid_p>1
    const_buf = 1 if single_buffer else 2
    # per-step resident weight blocks
    chunked_w = ((H_pad + M_pad) * tp + tp * R_pad) * weight_itemsize + 2 * tp * 4
    const_w = H_pad * R_pad * weight_itemsize + R_pad * 4
    # double-buffered row tiles (ctx, uni, cal bf16; out f32)
    row_tiles = 2 * tn * (H_pad + M_pad + R_pad) * act_itemsize + 2 * tn * R_pad * 4
    # f32 intermediates (ctx_gate, up, visual_rep), bf16 cast of visual_rep, acc scratch
    temps = 3 * tn * tp * 4 + tn * tp * weight_itemsize + tn * R_pad * 4
    margin = 2 << 20
    return chunk_buf * chunked_w + const_buf * const_w + row_tiles + temps + margin


def _choose_tn(N, vmem_cap, tn_max=None):
    if tn_max is None:
        # v7x (64 MiB/TC): tn=128 halves f32 intermediates and guarantees >=2 row
        # tiles for moderate N (feeds both TensorCores).  v5e/v6e: tn=256.
        tn_max = 128 if vmem_cap <= 64 * 1024 * 1024 else 256
    tn = min(tn_max, _round_up(max(N, 1), 16))
    # Bound row-padding waste: a 256-tile tail that only needs <=128 rows wastes
    # a full extra MXU pass; drop to 128-row tiles in that case.
    if tn >= 256 and N > 128 and (N % 256) != 0 and (N % 256) <= 128:
        tn = 128
    return tn


# ----------------------------------------------------------------------------
# Wrapper: pad ragged rows, choose tiles, build grid/BlockSpecs, call the kernel
# ----------------------------------------------------------------------------
def tcar_rel_dists(edge_ctx, union_features, zs_test_cal, fused,
                   *, act_dtype=jnp.bfloat16, tn_max=None, tp_max=None):
    """Fused TCAR relation head. edge_ctx (N,H), union (N,M), cal (N,R) -> (N,R)."""
    N = edge_ctx.shape[0]
    H, M, P, R = fused["dims"]
    H_pad, M_pad, P_pad, R_pad = fused["padded"]
    padded = (H_pad, M_pad, P_pad, R_pad)

    vmem_cap = _vmem_capacity_bytes()
    cap = (100 * (1 << 20) if vmem_cap >= 96 * (1 << 20)
           else max(vmem_cap - 8 * (1 << 20), 16 * (1 << 20)))

    tn = _choose_tn(N, vmem_cap, tn_max)
    N_pad = _round_up(N, tn)
    grid_n = N_pad // tn

    # P-chunk size: largest multiple of 128 dividing P_pad whose footprint fits
    # the per-generation budget; smaller chunks stream w_post/w_up/w_rel (v7x
    # fallback when weights don't fit fully resident).
    candidates = [P_pad] + [c for c in (2048, 1024, 512, 256, 128)
                            if c < P_pad and P_pad % c == 0]
    if tp_max is not None:
        candidates = [c for c in candidates if c <= tp_max] or [candidates[-1]]
    tp = candidates[-1]
    for c in candidates:
        if _estimate_vmem(tn, c, padded, grid_p=P_pad // c,
                          single_buffer=True) <= cap:
            tp = c
            break
    grid_p = P_pad // tp

    def pad_rc(x, rows, cols, dtype):
        return jnp.pad(x, ((0, rows - x.shape[0]),
                           (0, cols - x.shape[1]))).astype(dtype)

    ctx_p = pad_rc(edge_ctx, N_pad, H_pad, act_dtype)
    uni_p = pad_rc(union_features, N_pad, M_pad, act_dtype)
    # {-1, 0, 1} calibration values are exact in bf16 -> half the cal DMA bytes.
    cal_p = pad_rc(zs_test_cal.astype(jnp.float32), N_pad, R_pad, jnp.bfloat16)

    weight_keys = ("w_post", "b_post", "w_up", "b_up", "w_rel", "w_ctx", "b_tail")
    weight_bytes = sum(_nbytes(fused[k]) for k in weight_keys)
    flops = 2 * N_pad * (H_pad * P_pad + M_pad * P_pad + P_pad * R_pad + H_pad * R_pad)
    bytes_accessed = (weight_bytes + _nbytes(ctx_p) + _nbytes(uni_p)
                      + _nbytes(cal_p) + N_pad * R_pad * 4)
    try:
        cost = pl.CostEstimate(flops=flops, transcendentals=0,
                               bytes_accessed=bytes_accessed)
    except Exception:
        cost = None

    def _call(single_buffer):
        need = _estimate_vmem(tn, tp, padded, grid_p=grid_p,
                              single_buffer=single_buffer)
        vmem_limit = int(min(cap, max(need, 16 * (1 << 20))))

        def wspec(shape, index_map, *, constant=False):
            # Single-buffer weights whose block never changes across the grid:
            # constant-index specs always; chunked specs only when grid_p == 1.
            if single_buffer and (constant or grid_p == 1):
                return pl.BlockSpec(shape, index_map, pipeline_mode=pl.Buffered(1))
            return pl.BlockSpec(shape, index_map)

        in_specs = [
            pl.BlockSpec((tn, H_pad), lambda i, pc: (i, 0)),   # edge_ctx rows
            pl.BlockSpec((tn, M_pad), lambda i, pc: (i, 0)),   # union rows
            pl.BlockSpec((tn, R_pad), lambda i, pc: (i, 0)),   # zs_test_cal rows
            wspec((H_pad, tp), lambda i, pc: (0, pc)),         # w_post chunk
            wspec((1, tp),     lambda i, pc: (0, pc)),         # b_post chunk
            wspec((M_pad, tp), lambda i, pc: (0, pc)),         # w_up chunk
            wspec((1, tp),     lambda i, pc: (0, pc)),         # b_up chunk
            wspec((tp, R_pad), lambda i, pc: (pc, 0)),         # w_rel chunk
            wspec((H_pad, R_pad), lambda i, pc: (0, 0), constant=True),  # w_ctx
            wspec((1, R_pad),     lambda i, pc: (0, 0), constant=True),  # b_rel+b_ctx
        ]
        out_spec = pl.BlockSpec((tn, R_pad), lambda i, pc: (i, 0))

        return pl.pallas_call(
            _tcar_rel_kernel,
            out_shape=jax.ShapeDtypeStruct((N_pad, R_pad), jnp.float32),
            grid_spec=pltpu.PrefetchScalarGridSpec(
                num_scalar_prefetch=0,
                grid=(grid_n, grid_p),
                in_specs=in_specs,
                out_specs=out_spec,
                scratch_shapes=[pltpu.VMEM((tn, R_pad), jnp.float32)]),
            compiler_params=pltpu.CompilerParams(
                dimension_semantics=("parallel", "arbitrary"),
                vmem_limit_bytes=vmem_limit),
            cost_estimate=cost,
        )(ctx_p, uni_p, cal_p,
          fused["w_post"], fused["b_post"], fused["w_up"], fused["b_up"],
          fused["w_rel"], fused["w_ctx"], fused["b_tail"])

    try:
        out = _call(True)
    except Exception:
        # Fallback for jax builds that reject pipeline_mode=pl.Buffered(1).
        out = _call(False)

    return out[:N, :R]


# ----------------------------------------------------------------------------
# Deterministic parameter / statistics-buffer setup (glue)
# ----------------------------------------------------------------------------
def xavier(key, fan_in, fan_out):
    bound = float(np.sqrt(6.0 / (fan_in + fan_out)))
    return jax.random.uniform(key, (fan_in, fan_out), jnp.float32, -bound, bound)


def build_params(key, hidden_dim, pooling_dim, mlp_head_dim, num_rel_cls):
    ks = jax.random.split(key, 4)
    return {
        "w_post": xavier(ks[0], hidden_dim, pooling_dim),
        "b_post": jnp.zeros((1, pooling_dim), jnp.float32),
        "w_up":   xavier(ks[1], mlp_head_dim, pooling_dim),
        "b_up":   jnp.zeros((1, pooling_dim), jnp.float32),
        "w_rel":  xavier(ks[2], pooling_dim, num_rel_cls),
        "b_rel":  jnp.zeros((1, num_rel_cls), jnp.float32),
        "w_ctx":  xavier(ks[3], hidden_dim, num_rel_cls),
        "b_ctx":  jnp.zeros((1, num_rel_cls), jnp.float32),
    }


def build_statistic_buffers(key, num_obj_cls, num_rel_cls, prune_rate):
    """Recreates __init__'s zs_indicator / test_indicator / none_prune_idx buffers.

    Tables are int8 (values in {-1, 0, 1}) instead of int64 -> 8x smaller gather.
    """
    k1, k2, k3 = jax.random.split(key, 3)
    shape = (num_obj_cls, num_obj_cls, num_rel_cls)
    alpha = np.asarray(jax.random.normal(k1, shape, jnp.float32))
    alpha_mask = np.asarray(jax.random.bernoulli(k2, 0.5, shape))
    alpha_mat = np.where(alpha_mask, alpha, 0.0).astype(np.float32)
    prune_mat = np.abs(np.asarray(jax.random.normal(k3, shape, jnp.float32)))

    values = prune_mat[prune_mat != 0]
    sort_values = np.sort(values)
    length = values.shape[0]
    r_length = int((length - 1) * prune_rate)
    if r_length >= len(sort_values):
        prune_rate_v = sort_values[-1] + 1
    else:
        prune_rate_v = sort_values[r_length]

    zs_indicator = np.zeros(shape, dtype=np.int8)
    zs_indicator[alpha_mat == 0] = 1
    zs_indicator[alpha_mat != 0] = -1
    test_indicator = zs_indicator.copy()
    cond = (alpha_mat == 0) & (prune_mat < prune_rate_v)
    test_indicator[cond] = -1
    zs_indicator[cond] = 0
    none_prune_idx = np.zeros(shape, dtype=np.int8)
    none_prune_idx[(alpha_mat == 0) & (prune_mat >= prune_rate_v)] = 1

    return {
        "alpha_mat": jnp.asarray(alpha_mat),
        "zs_indicator": jnp.asarray(zs_indicator),
        "test_indicator": jnp.asarray(test_indicator),
        "none_prune_idx": jnp.asarray(none_prune_idx),
    }


# ----------------------------------------------------------------------------
# Forward pass (eval mode) — glue in plain JAX, hot path in the Pallas kernel
# ----------------------------------------------------------------------------
def tcar_predictor_forward(num_objs, num_rels, rel_pair_idxs,
                           obj_dists, obj_preds, edge_ctx,
                           union_features, buffers, fused_params):
    # pair predictions (predicted classes of subject/object of each pair)
    obj_pred_splits, off = [], 0
    for n in num_objs:
        obj_pred_splits.append(obj_preds[off:off + n])
        off += n
    pair_preds = []
    for pair_idx, obj_pred in zip(rel_pair_idxs, obj_pred_splits):
        pair_preds.append(jnp.stack((obj_pred[pair_idx[:, 0]],
                                     obj_pred[pair_idx[:, 1]]), axis=1))
    pair_pred = jnp.concatenate(pair_preds, axis=0).astype(jnp.int32)

    # zs_test_cal = test_indicator[subj_cls, obj_cls, :]   (eval calibration term)
    zs_test_cal = buffers["test_indicator"][pair_pred[:, 0],
                                            pair_pred[:, 1], :].astype(jnp.float32)

    # fused relation head (Pallas kernel)
    rel_dists = tcar_rel_dists(edge_ctx, union_features, zs_test_cal, fused_params)

    # split outputs per image
    obj_dists_out, off = [], 0
    for n in num_objs:
        obj_dists_out.append(obj_dists[off:off + n])
        off += n
    rel_dists_out, off = [], 0
    for n in num_rels:
        rel_dists_out.append(rel_dists[off:off + n])
        off += n
    add_losses = {}   # eval mode
    return obj_dists_out, rel_dists_out, add_losses, zs_test_cal


# ----------------------------------------------------------------------------
# Main
# ----------------------------------------------------------------------------
if __name__ == "__main__":
    # small config
    NUM_OBJ_CLS = 8
    NUM_REL_CLS = 16
    IN_CHANNELS = 32
    HIDDEN_DIM = 32        # CONTEXT_HIDDEN_DIM
    POOLING_DIM = 64       # CONTEXT_POOLING_DIM
    MLP_HEAD_DIM = 32      # != POOLING_DIM -> union_single_not_match = True
    PRUNE_RATE = 0.5
    num_objs = [4, 4]
    num_rels = [8, 8]
    N_OBJ = sum(num_objs)
    N_REL = sum(num_rels)

    key = jax.random.PRNGKey(0)
    k_param, k_stat, k_roi, k_uni, k_pair, k_ctxw = jax.random.split(key, 6)

    params = build_params(k_param, HIDDEN_DIM, POOLING_DIM, MLP_HEAD_DIM, NUM_REL_CLS)
    fused_params = prepare_fused_rel_params(params, weight_dtype=jnp.bfloat16)
    buffers = build_statistic_buffers(k_stat, NUM_OBJ_CLS, NUM_REL_CLS, PRUNE_RATE)

    # inputs the real module receives
    roi_features = jax.random.normal(k_roi, (N_OBJ, IN_CHANNELS), jnp.float32)
    union_features = jax.random.normal(k_uni, (N_REL, MLP_HEAD_DIM), jnp.float32)
    rel_pair_idxs = []
    kp = k_pair
    for n_obj, n_rel in zip(num_objs, num_rels):
        kp, sub = jax.random.split(kp)
        rel_pair_idxs.append(jax.random.randint(sub, (n_rel, 2), 0, n_obj))

    # TODO(synk): stand-in for FusionPosTransRelContext context_layer outputs.
    kw1, kw2 = jax.random.split(k_ctxw)
    w_obj_standin = xavier(kw1, IN_CHANNELS, NUM_OBJ_CLS)
    w_edge_standin = xavier(kw2, IN_CHANNELS, HIDDEN_DIM)
    obj_dists = roi_features @ w_obj_standin                       # (N_OBJ, NUM_OBJ_CLS)
    obj_preds = jnp.argmax(obj_dists, axis=1).astype(jnp.int32)    # (N_OBJ,)
    edge_ctx_parts, off = [], 0
    for n_obj, pair_idx in zip(num_objs, rel_pair_idxs):
        roi_i = roi_features[off:off + n_obj]
        edge_ctx_parts.append((roi_i[pair_idx[:, 0]] + roi_i[pair_idx[:, 1]]) @ w_edge_standin)
        off += n_obj
    edge_ctx = jnp.concatenate(edge_ctx_parts, axis=0)             # (N_REL, HIDDEN_DIM)

    obj_dists_out, rel_dists_out, add_losses, zs_test_cal = tcar_predictor_forward(
        num_objs, num_rels, rel_pair_idxs,
        obj_dists, obj_preds, edge_ctx, union_features, buffers, fused_params)

    rel_dists_all = jnp.concatenate(rel_dists_out, axis=0)
    jax.block_until_ready(rel_dists_all)

    # Pure-JAX reference of the fused hot path, mirroring the kernel's bf16
    # matmul inputs with f32 accumulation (weights are bf16 by design).
    wd = jnp.bfloat16
    ctx_b = edge_ctx.astype(wd)
    uni_b = union_features.astype(wd)
    ctx_gate_ref = jnp.dot(ctx_b, params["w_post"].astype(wd),
                           preferred_element_type=jnp.float32) + params["b_post"]
    up_ref = jnp.dot(uni_b, params["w_up"].astype(wd),
                     preferred_element_type=jnp.float32) + params["b_up"]
    vis_ref = ctx_gate_ref * up_ref
    rel_ref = (jnp.dot(vis_ref.astype(wd), params["w_rel"].astype(wd),
                       preferred_element_type=jnp.float32) + params["b_rel"]
               + jnp.dot(ctx_b, params["w_ctx"].astype(wd),
                         preferred_element_type=jnp.float32) + params["b_ctx"]
               + zs_test_cal)
    np.testing.assert_allclose(np.asarray(rel_dists_all), np.asarray(rel_ref),
                               rtol=2e-3, atol=2e-3)

    print("KERNEL_OK")
</pallas_src>

<mosaic_0001>
module attributes {stable_mosaic.version = 11 : i64} {
  func.func @_tcar_rel_kernel(%arg0: i32, %arg1: i32, %arg2: memref<16x128xbf16, #tpu.memory_space<vmem>>, %arg3: memref<16x128xbf16, #tpu.memory_space<vmem>>, %arg4: memref<16x128xbf16, #tpu.memory_space<vmem>>, %arg5: memref<128x128xbf16, #tpu.memory_space<vmem>>, %arg6: memref<1x128xf32, #tpu.memory_space<vmem>>, %arg7: memref<128x128xbf16, #tpu.memory_space<vmem>>, %arg8: memref<1x128xf32, #tpu.memory_space<vmem>>, %arg9: memref<128x128xbf16, #tpu.memory_space<vmem>>, %arg10: memref<128x128xbf16, #tpu.memory_space<vmem>>, %arg11: memref<1x128xf32, #tpu.memory_space<vmem>>, %arg12: memref<16x128xf32, #tpu.memory_space<vmem>>, %arg13: memref<16x128xf32, #tpu.memory_space<vmem>>) attributes {dimension_semantics = [#tpu.dimension_semantics<parallel>, #tpu.dimension_semantics<arbitrary>], iteration_bounds = array<i64: 1, 1>, scalar_prefetch = 0 : i64, scratch_operands = 1 : i64, tpu.core_type = #tpu.core_type<tc>, window_params = [{transform_indices = @transform_0, window_bounds = array<i64: 16, 128>}, {transform_indices = @transform_1, window_bounds = array<i64: 16, 128>}, {transform_indices = @transform_2, window_bounds = array<i64: 16, 128>}, {pipeline_mode = #tpu.pipeline_mode<synchronous>, transform_indices = @transform_3, window_bounds = array<i64: 128, 128>}, {pipeline_mode = #tpu.pipeline_mode<synchronous>, transform_indices = @transform_4, window_bounds = array<i64: 1, 128>}, {pipeline_mode = #tpu.pipeline_mode<synchronous>, transform_indices = @transform_5, window_bounds = array<i64: 128, 128>}, {pipeline_mode = #tpu.pipeline_mode<synchronous>, transform_indices = @transform_6, window_bounds = array<i64: 1, 128>}, {pipeline_mode = #tpu.pipeline_mode<synchronous>, transform_indices = @transform_7, window_bounds = array<i64: 128, 128>}, {pipeline_mode = #tpu.pipeline_mode<synchronous>, transform_indices = @transform_8, window_bounds = array<i64: 128, 128>}, {pipeline_mode = #tpu.pipeline_mode<synchronous>, transform_indices = @transform_9, window_bounds = array<i64: 1, 128>}, {transform_indices = @transform_10, window_bounds = array<i64: 16, 128>}]} {
    %c0_i32 = arith.constant 0 : i32
    %0 = arith.cmpi eq, %arg1, %c0_i32 : i32
    %1 = arith.extui %0 : i1 to i32
    %c0_i32_0 = arith.constant 0 : i32
    %2 = arith.cmpi ne, %1, %c0_i32_0 : i32
    scf.if %2 {
      %cst_22 = arith.constant 0.000000e+00 : f32
      %25 = vector.broadcast %cst_22 : f32 to vector<16x128xf32>
      %c0_23 = arith.constant 0 : index
      %c0_24 = arith.constant 0 : index
      %26 = vector.load %arg13[%c0_23, %c0_24] : memref<16x128xf32, #tpu.memory_space<vmem>>, vector<16x128xf32>
      tpu.vector_store %arg13[%c0_23, %c0_24], %25 {strides = array<i32>} : memref<16x128xf32, #tpu.memory_space<vmem>>, vector<16x128xf32>,
    } else {
    }
    %c0 = arith.constant 0 : index
    %c0_1 = arith.constant 0 : index
    %3 = vector.load %arg2[%c0, %c0_1] : memref<16x128xbf16, #tpu.memory_space<vmem>>, vector<16x128xbf16>
    %c0_2 = arith.constant 0 : index
    %c0_3 = arith.constant 0 : index
    %4 = vector.load %arg3[%c0_2, %c0_3] : memref<16x128xbf16, #tpu.memory_space<vmem>>, vector<16x128xbf16>
    %c0_4 = arith.constant 0 : index
    %c0_5 = arith.constant 0 : index
    %5 = vector.load %arg5[%c0_4, %c0_5] : memref<128x128xbf16, #tpu.memory_space<vmem>>, vector<128x128xbf16>
    %cst = arith.constant dense<0.000000e+00> : vector<16x128xf32>
    %6 = tpu.matmul %3, %5, %cst {dimension_numbers = #tpu.dot_dimension_numbers<[1], [0], [0], [1], [0, 0, 1, 1], [], []>} : vector<16x128xbf16>, vector<128x128xbf16>, vector<16x128xf32> -> vector<16x128xf32>
    %c0_6 = arith.constant 0 : index
    %c0_7 = arith.constant 0 : index
    %7 = vector.load %arg6[%c0_6, %c0_7] : memref<1x128xf32, #tpu.memory_space<vmem>>, vector<1x128xf32>
    %8 = vector.broadcast %7 : vector<1x128xf32> to vector<16x128xf32>
    %9 = arith.addf %6, %8 : vector<16x128xf32>
    %c0_8 = arith.constant 0 : index
    %c0_9 = arith.constant 0 : index
    %10 = vector.load %arg7[%c0_8, %c0_9] : memref<128x128xbf16, #tpu.memory_space<vmem>>, vector<128x128xbf16>
    %cst_10 = arith.constant dense<0.000000e+00> : vector<16x128xf32>
    %11 = tpu.matmul %4, %10, %cst_10 {dimension_numbers = #tpu.dot_dimension_numbers<[1], [0], [0], [1], [0, 0, 1, 1], [], []>} : vector<16x128xbf16>, vector<128x128xbf16>, vector<16x128xf32> -> vector<16x128xf32>
    %c0_11 = arith.constant 0 : index
    %c0_12 = arith.constant 0 : index
    %12 = vector.load %arg8[%c0_11, %c0_12] : memref<1x128xf32, #tpu.memory_space<vmem>>, vector<1x128xf32>
    %13 = vector.broadcast %12 : vector<1x128xf32> to vector<16x128xf32>
    %14 = arith.addf %11, %13 : vector<16x128xf32>
    %15 = arith.mulf %9, %14 : vector<16x128xf32>
    %c0_13 = arith.constant 0 : index
    %c0_14 = arith.constant 0 : index
    %16 = vector.load %arg13[%c0_13, %c0_14] : memref<16x128xf32, #tpu.memory_space<vmem>>, vector<16x128xf32>
    %17 = arith.truncf %15 : vector<16x128xf32> to vector<16x128xbf16>
    %c0_15 = arith.constant 0 : index
    %c0_16 = arith.constant 0 : index
    %18 = vector.load %arg9[%c0_15, %c0_16] : memref<128x128xbf16, #tpu.memory_space<vmem>>, vector<128x128xbf16>
    %cst_17 = arith.constant dense<0.000000e+00> : vector<16x128xf32>
    %19 = tpu.matmul %17, %18, %cst_17 {dimension_numbers = #tpu.dot_dimension_numbers<[1], [0], [0], [1], [0, 0, 1, 1], [], []>} : vector<16x128xbf16>, vector<128x128xbf16>, vector<16x128xf32> -> vector<16x128xf32>
    %20 = arith.addf %16, %19 : vector<16x128xf32>
    %c0_18 = arith.constant 0 : index
    %c0_19 = arith.constant 0 : index
    %21 = vector.load %arg13[%c0_18, %c0_19] : memref<16x128xf32, #tpu.memory_space<vmem>>, vector<16x128xf32>
    tpu.vector_store %arg13[%c0_18, %c0_19], %20 {strides = array<i32>} : memref<16x128xf32, #tpu.memory_space<vmem>>, vector<16x128xf32>,
    %c0_i32_20 = arith.constant 0 : i32
    %22 = arith.cmpi eq, %arg1, %c0_i32_20 : i32
    %23 = arith.extui %22 : i1 to i32
    %c0_i32_21 = arith.constant 0 : i32
    %24 = arith.cmpi ne, %23, %c0_i32_21 : i32
    scf.if %24 {
      %c0_22 = arith.constant 0 : index
      %c0_23 = arith.constant 0 : index
      %25 = vector.load %arg13[%c0_22, %c0_23] : memref<16x128xf32, #tpu.memory_space<vmem>>, vector<16x128xf32>
      %c0_24 = arith.constant 0 : index
      %c0_25 = arith.constant 0 : index
      %26 = vector.load %arg10[%c0_24, %c0_25] : memref<128x128xbf16, #tpu.memory_space<vmem>>, vector<128x128xbf16>
      %cst_26 = arith.constant dense<0.000000e+00> : vector<16x128xf32>
      %27 = tpu.matmul %3, %26, %cst_26 {dimension_numbers = #tpu.dot_dimension_numbers<[1], [0], [0], [1], [0, 0, 1, 1], [], []>} : vector<16x128xbf16>, vector<128x128xbf16>, vector<16x128xf32> -> vector<16x128xf32>
      %28 = arith.addf %25, %27 : vector<16x128xf32>
      %c0_27 = arith.constant 0 : index
      %c0_28 = arith.constant 0 : index
      %29 = vector.load %arg11[%c0_27, %c0_28] : memref<1x128xf32, #tpu.memory_space<vmem>>, vector<1x128xf32>
      %30 = vector.broadcast %29 : vector<1x128xf32> to vector<16x128xf32>
      %31 = arith.addf %28, %30 : vector<16x128xf32>
      %c0_29 = arith.constant 0 : index
      %c0_30 = arith.constant 0 : index
      %32 = vector.load %arg4[%c0_29, %c0_30] : memref<16x128xbf16, #tpu.memory_space<vmem>>, vector<16x128xbf16>
      %33 = arith.extf %32 : vector<16x128xbf16> to vector<16x128xf32>
      %34 = arith.addf %31, %33 : vector<16x128xf32>
      %c0_31 = arith.constant 0 : index
      %c0_32 = arith.constant 0 : index
      %35 = vector.load %arg12[%c0_31, %c0_32] : memref<16x128xf32, #tpu.memory_space<vmem>>, vector<16x128xf32>
      tpu.vector_store %arg12[%c0_31, %c0_32], %34 {strides = array<i32>} : memref<16x128xf32, #tpu.memory_space<vmem>>, vector<16x128xf32>,
    } else {
    }
    return
  }
  func.func @transform_0(%arg0: i32, %arg1: i32) -> (i32, i32) {
    %c0_i32 = arith.constant 0 : i32
    %c0_i32_0 = arith.constant 0 : i32
    return %arg0, %c0_i32 : i32, i32
  }
  func.func @transform_1(%arg0: i32, %arg1: i32) -> (i32, i32) {
    %c0_i32 = arith.constant 0 : i32
    %c0_i32_0 = arith.constant 0 : i32
    return %arg0, %c0_i32 : i32, i32
  }
  func.func @transform_2(%arg0: i32, %arg1: i32) -> (i32, i32) {
    %c0_i32 = arith.constant 0 : i32
    %c0_i32_0 = arith.constant 0 : i32
    return %arg0, %c0_i32 : i32, i32
  }
  func.func @transform_3(%arg0: i32, %arg1: i32) -> (i32, i32) {
    %c0_i32 = arith.constant 0 : i32
    %c0_i32_0 = arith.constant 0 : i32
    return %c0_i32, %arg1 : i32, i32
  }
  func.func @transform_4(%arg0: i32, %arg1: i32) -> (i32, i32) {
    %c0_i32 = arith.constant 0 : i32
    %c0_i32_0 = arith.constant 0 : i32
    return %c0_i32, %arg1 : i32, i32
  }
  func.func @transform_5(%arg0: i32, %arg1: i32) -> (i32, i32) {
    %c0_i32 = arith.constant 0 : i32
    %c0_i32_0 = arith.constant 0 : i32
    return %c0_i32, %arg1 : i32, i32
  }
  func.func @transform_6(%arg0: i32, %arg1: i32) -> (i32, i32) {
    %c0_i32 = arith.constant 0 : i32
    %c0_i32_0 = arith.constant 0 : i32
    return %c0_i32, %arg1 : i32, i32
  }
  func.func @transform_7(%arg0: i32, %arg1: i32) -> (i32, i32) {
    %c0_i32 = arith.constant 0 : i32
    %c0_i32_0 = arith.constant 0 : i32
    return %arg1, %c0_i32 : i32, i32
  }
  func.func @transform_8(%arg0: i32, %arg1: i32) -> (i32, i32) {
    %c0_i32 = arith.constant 0 : i32
    %c0_i32_0 = arith.constant 0 : i32
    %c0_i32_1 = arith.constant 0 : i32
    return %c0_i32, %c0_i32_0 : i32, i32
  }
  func.func @transform_9(%arg0: i32, %arg1: i32) -> (i32, i32) {
    %c0_i32 = arith.constant 0 : i32
    %c0_i32_0 = arith.constant 0 : i32
    %c0_i32_1 = arith.constant 0 : i32
    return %c0_i32, %c0_i32_0 : i32, i32
  }
  func.func @transform_10(%arg0: i32, %arg1: i32) -> (i32, i32) {
    %c0_i32 = arith.constant 0 : i32
    %c0_i32_0 = arith.constant 0 : i32
    return %arg0, %c0_i32 : i32, i32
  }
}

module attributes {stable_mosaic.version = 11 : i64} {
  func.func @_tcar_rel_kernel(%arg0: i32, %arg1: i32, %arg2: memref<16x128xbf16, #tpu.memory_space<vmem>>, %arg3: memref<16x128xbf16, #tpu.memory_space<vmem>>, %arg4: memref<16x128xbf16, #tpu.memory_space<vmem>>, %arg5: memref<128x128xbf16, #tpu.memory_space<vmem>>, %arg6: memref<1x128xf32, #tpu.memory_space<vmem>>, %arg7: memref<128x128xbf16, #tpu.memory_space<vmem>>, %arg8: memref<1x128xf32, #tpu.memory_space<vmem>>, %arg9: memref<128x128xbf16, #tpu.memory_space<vmem>>, %arg10: memref<128x128xbf16, #tpu.memory_space<vmem>>, %arg11: memref<1x128xf32, #tpu.memory_space<vmem>>, %arg12: memref<16x128xf32, #tpu.memory_space<vmem>>, %arg13: memref<16x128xf32, #tpu.memory_space<vmem>>) attributes {dimension_semantics = [#tpu.dimension_semantics<parallel>, #tpu.dimension_semantics<arbitrary>], iteration_bounds = array<i64: 1, 1>, scalar_prefetch = 0 : i64, scratch_operands = 1 : i64, tpu.core_type = #tpu.core_type<tc>, window_params = [{transform_indices = @transform_0, window_bounds = array<i64: 16, 128>}, {transform_indices = @transform_1, window_bounds = array<i64: 16, 128>}, {transform_indices = @transform_2, window_bounds = array<i64: 16, 128>}, {transform_indices = @transform_3, window_bounds = array<i64: 128, 128>}, {transform_indices = @transform_4, window_bounds = array<i64: 1, 128>}, {transform_indices = @transform_5, window_bounds = array<i64: 128, 128>}, {transform_indices = @transform_6, window_bounds = array<i64: 1, 128>}, {transform_indices = @transform_7, window_bounds = array<i64: 128, 128>}, {pipeline_mode = #tpu.pipeline_mode<synchronous>, transform_indices = @transform_8, window_bounds = array<i64: 128, 128>}, {pipeline_mode = #tpu.pipeline_mode<synchronous>, transform_indices = @transform_9, window_bounds = array<i64: 1, 128>}, {transform_indices = @transform_10, window_bounds = array<i64: 16, 128>}]} {
    %c0_i32 = arith.constant 0 : i32
    %0 = arith.cmpi eq, %arg1, %c0_i32 : i32
    %1 = arith.extui %0 : i1 to i32
    %c0_i32_0 = arith.constant 0 : i32
    %2 = arith.cmpi ne, %1, %c0_i32_0 : i32
    scf.if %2 {
      %cst_22 = arith.constant 0.000000e+00 : f32
      %25 = vector.broadcast %cst_22 : f32 to vector<16x128xf32>
      %c0_23 = arith.constant 0 : index
      %c0_24 = arith.constant 0 : index
      %26 = vector.load %arg13[%c0_23, %c0_24] : memref<16x128xf32, #tpu.memory_space<vmem>>, vector<16x128xf32>
      tpu.vector_store %arg13[%c0_23, %c0_24], %25 {strides = array<i32>} : memref<16x128xf32, #tpu.memory_space<vmem>>, vector<16x128xf32>,
    } else {
    }
    %c0 = arith.constant 0 : index
    %c0_1 = arith.constant 0 : index
    %3 = vector.load %arg2[%c0, %c0_1] : memref<16x128xbf16, #tpu.memory_space<vmem>>, vector<16x128xbf16>
    %c0_2 = arith.constant 0 : index
    %c0_3 = arith.constant 0 : index
    %4 = vector.load %arg3[%c0_2, %c0_3] : memref<16x128xbf16, #tpu.memory_space<vmem>>, vector<16x128xbf16>
    %c0_4 = arith.constant 0 : index
    %c0_5 = arith.constant 0 : index
    %5 = vector.load %arg5[%c0_4, %c0_5] : memref<128x128xbf16, #tpu.memory_space<vmem>>, vector<128x128xbf16>
    %cst = arith.constant dense<0.000000e+00> : vector<16x128xf32>
    %6 = tpu.matmul %3, %5, %cst {dimension_numbers = #tpu.dot_dimension_numbers<[1], [0], [0], [1], [0, 0, 1, 1], [], []>} : vector<16x128xbf16>, vector<128x128xbf16>, vector<16x128xf32> -> vector<16x128xf32>
    %c0_6 = arith.constant 0 : index
    %c0_7 = arith.constant 0 : index
    %7 = vector.load %arg6[%c0_6, %c0_7] : memref<1x128xf32, #tpu.memory_space<vmem>>, vector<1x128xf32>
    %8 = vector.broadcast %7 : vector<1x128xf32> to vector<16x128xf32>
    %9 = arith.addf %6, %8 : vector<16x128xf32>
    %c0_8 = arith.constant 0 : index
    %c0_9 = arith.constant 0 : index
    %10 = vector.load %arg7[%c0_8, %c0_9] : memref<128x128xbf16, #tpu.memory_space<vmem>>, vector<128x128xbf16>
    %cst_10 = arith.constant dense<0.000000e+00> : vector<16x128xf32>
    %11 = tpu.matmul %4, %10, %cst_10 {dimension_numbers = #tpu.dot_dimension_numbers<[1], [0], [0], [1], [0, 0, 1, 1], [], []>} : vector<16x128xbf16>, vector<128x128xbf16>, vector<16x128xf32> -> vector<16x128xf32>
    %c0_11 = arith.constant 0 : index
    %c0_12 = arith.constant 0 : index
    %12 = vector.load %arg8[%c0_11, %c0_12] : memref<1x128xf32, #tpu.memory_space<vmem>>, vector<1x128xf32>
    %13 = vector.broadcast %12 : vector<1x128xf32> to vector<16x128xf32>
    %14 = arith.addf %11, %13 : vector<16x128xf32>
    %15 = arith.mulf %9, %14 : vector<16x128xf32>
    %c0_13 = arith.constant 0 : index
    %c0_14 = arith.constant 0 : index
    %16 = vector.load %arg13[%c0_13, %c0_14] : memref<16x128xf32, #tpu.memory_space<vmem>>, vector<16x128xf32>
    %17 = arith.truncf %15 : vector<16x128xf32> to vector<16x128xbf16>
    %c0_15 = arith.constant 0 : index
    %c0_16 = arith.constant 0 : index
    %18 = vector.load %arg9[%c0_15, %c0_16] : memref<128x128xbf16, #tpu.memory_space<vmem>>, vector<128x128xbf16>
    %cst_17 = arith.constant dense<0.000000e+00> : vector<16x128xf32>
    %19 = tpu.matmul %17, %18, %cst_17 {dimension_numbers = #tpu.dot_dimension_numbers<[1], [0], [0], [1], [0, 0, 1, 1], [], []>} : vector<16x128xbf16>, vector<128x128xbf16>, vector<16x128xf32> -> vector<16x128xf32>
    %20 = arith.addf %16, %19 : vector<16x128xf32>
    %c0_18 = arith.constant 0 : index
    %c0_19 = arith.constant 0 : index
    %21 = vector.load %arg13[%c0_18, %c0_19] : memref<16x128xf32, #tpu.memory_space<vmem>>, vector<16x128xf32>
    tpu.vector_store %arg13[%c0_18, %c0_19], %20 {strides = array<i32>} : memref<16x128xf32, #tpu.memory_space<vmem>>, vector<16x128xf32>,
    %c0_i32_20 = arith.constant 0 : i32
    %22 = arith.cmpi eq, %arg1, %c0_i32_20 : i32
    %23 = arith.extui %22 : i1 to i32
    %c0_i32_21 = arith.constant 0 : i32
    %24 = arith.cmpi ne, %23, %c0_i32_21 : i32
    scf.if %24 {
      %c0_22 = arith.constant 0 : index
      %c0_23 = arith.constant 0 : index
      %25 = vector.load %arg13[%c0_22, %c0_23] : memref<16x128xf32, #tpu.memory_space<vmem>>, vector<16x128xf32>
      %c0_24 = arith.constant 0 : index
      %c0_25 = arith.constant 0 : index
      %26 = vector.load %arg10[%c0_24, %c0_25] : memref<128x128xbf16, #tpu.memory_space<vmem>>, vector<128x128xbf16>
      %cst_26 = arith.constant dense<0.000000e+00> : vector<16x128xf32>
      %27 = tpu.matmul %3, %26, %cst_26 {dimension_numbers = #tpu.dot_dimension_numbers<[1], [0], [0], [1], [0, 0, 1, 1], [], []>} : vector<16x128xbf16>, vector<128x128xbf16>, vector<16x128xf32> -> vector<16x128xf32>
      %28 = arith.addf %25, %27 : vector<16x128xf32>
      %c0_27 = arith.constant 0 : index
      %c0_28 = arith.constant 0 : index
      %29 = vector.load %arg11[%c0_27, %c0_28] : memref<1x128xf32, #tpu.memory_space<vmem>>, vector<1x128xf32>
      %30 = vector.broadcast %29 : vector<1x128xf32> to vector<16x128xf32>
      %31 = arith.addf %28, %30 : vector<16x128xf32>
      %c0_29 = arith.constant 0 : index
      %c0_30 = arith.constant 0 : index
      %32 = vector.load %arg4[%c0_29, %c0_30] : memref<16x128xbf16, #tpu.memory_space<vmem>>, vector<16x128xbf16>
      %33 = arith.extf %32 : vector<16x128xbf16> to vector<16x128xf32>
      %34 = arith.addf %31, %33 : vector<16x128xf32>
      %c0_31 = arith.constant 0 : index
      %c0_32 = arith.constant 0 : index
      %35 = vector.load %arg12[%c0_31, %c0_32] : memref<16x128xf32, #tpu.memory_space<vmem>>, vector<16x128xf32>
      tpu.vector_store %arg12[%c0_31, %c0_32], %34 {strides = array<i32>} : memref<16x128xf32, #tpu.memory_space<vmem>>, vector<16x128xf32>,
    } else {
    }
    return
  }
  func.func @transform_0(%arg0: i32, %arg1: i32) -> (i32, i32) {
    %c0_i32 = arith.constant 0 : i32
    %c0_i32_0 = arith.constant 0 : i32
    return %arg0, %c0_i32 : i32, i32
  }
  func.func @transform_1(%arg0: i32, %arg1: i32) -> (i32, i32) {
    %c0_i32 = arith.constant 0 : i32
    %c0_i32_0 = arith.constant 0 : i32
    return %arg0, %c0_i32 : i32, i32
  }
  func.func @transform_2(%arg0: i32, %arg1: i32) -> (i32, i32) {
    %c0_i32 = arith.constant 0 : i32
    %c0_i32_0 = arith.constant 0 : i32
    return %arg0, %c0_i32 : i32, i32
  }
  func.func @transform_3(%arg0: i32, %arg1: i32) -> (i32, i32) {
    %c0_i32 = arith.constant 0 : i32
    %c0_i32_0 = arith.constant 0 : i32
    return %c0_i32, %arg1 : i32, i32
  }
  func.func @transform_4(%arg0: i32, %arg1: i32) -> (i32, i32) {
    %c0_i32 = arith.constant 0 : i32
    %c0_i32_0 = arith.constant 0 : i32
    return %c0_i32, %arg1 : i32, i32
  }
  func.func @transform_5(%arg0: i32, %arg1: i32) -> (i32, i32) {
    %c0_i32 = arith.constant 0 : i32
    %c0_i32_0 = arith.constant 0 : i32
    return %c0_i32, %arg1 : i32, i32
  }
  func.func @transform_6(%arg0: i32, %arg1: i32) -> (i32, i32) {
    %c0_i32 = arith.constant 0 : i32
    %c0_i32_0 = arith.constant 0 : i32
    return %c0_i32, %arg1 : i32, i32
  }
  func.func @transform_7(%arg0: i32, %arg1: i32) -> (i32, i32) {
    %c0_i32 = arith.constant 0 : i32
    %c0_i32_0 = arith.constant 0 : i32
    return %arg1, %c0_i32 : i32, i32
  }
  func.func @transform_8(%arg0: i32, %arg1: i32) -> (i32, i32) {
    %c0_i32 = arith.constant 0 : i32
    %c0_i32_0 = arith.constant 0 : i32
    %c0_i32_1 = arith.constant 0 : i32
    return %c0_i32, %c0_i32_0 : i32, i32
  }
  func.func @transform_9(%arg0: i32, %arg1: i32) -> (i32, i32) {
    %c0_i32 = arith.constant 0 : i32
    %c0_i32_0 = arith.constant 0 : i32
    %c0_i32_1 = arith.constant 0 : i32
    return %c0_i32, %c0_i32_0 : i32, i32
  }
  func.func @transform_10(%arg0: i32, %arg1: i32) -> (i32, i32) {
    %c0_i32 = arith.constant 0 : i32
    %c0_i32_0 = arith.constant 0 : i32
    return %arg0, %c0_i32 : i32, i32
  }
}

</mosaic_0001>

<bundles_post_ra>
// kernel: tpu_custom_call.1
= control target key start
LH: loop header
LB: loop body
LE: loop exit
PB: predicated region body
PF: predicated region fallthrough
CT: control target
= control target key end

     0   :  { %15 = vsyncpa [#allocation4], 0  ;;  %s1288_s0 = inlined_call_operand.hbm [shape: bf16[16,128], index: 0, kind: input, shape index: {}]   ;;  %s1289_s1 = inlined_call_operand.hbm [shape: bf16[16,128], index: 1, kind: input, shape index: {}]   ;;  %s1290_s2 = inlined_call_operand.hbm [shape: bf16[16,128], index: 2, kind: input, shape index: {}]   ;;  %s1291_s3 = inlined_call_operand.hbm [shape: bf16[128,128], index: 3, kind: input, shape index: {}]   ;;  %s1292_s4 = inlined_call_operand.vmem [shape: f32[1,128], index: 4, kind: input, shape index: {}]   ;;  %s1293_s5 = inlined_call_operand.hbm [shape: bf16[128,128], index: 5, kind: input, shape index: {}]   ;;  %s1294_s6 = inlined_call_operand.vmem [shape: f32[1,128], index: 6, kind: input, shape index: {}]   ;;  %s1295_s7 = inlined_call_operand.hbm [shape: bf16[128,128], index: 7, kind: input, shape index: {}]   ;;  %s1296_s8 = inlined_call_operand.hbm [shape: bf16[128,128], index: 8, kind: input, shape index: {}]   ;;  %s1297_s9 = inlined_call_operand.vmem [shape: f32[1,128], index: 9, kind: input, shape index: {}]   ;;  %s1298_s10 = inlined_call_operand.hbm [shape: f32[16,128], index: 10, kind: output, shape index: {}]  }
   0x1   :  { %16 = vsyncpa [#allocation7], 0 }
   0x2   :  { %17 = vsyncpa [#allocation10], 0 }
   0x3   :  { %18 = vsyncpa [#allocation13], 0 }
   0x4   :  { %19 = vsyncpa [#allocation5], 0  ;;  %s1032_s13 = smov [#allocation6]   ;;  %s1033_s15 = smov [#allocation9]  }
   0x5   :  { %s37_s14 = sshll.u32 %s1032_s13, 4  ;;  %s61_s16 = sshll.u32 %s1033_s15, 4  ;;  %s38_s14 = int_to_ptr.vmem [resolvable:$true] %s37_s14  ;;  %s1101_s16 = int_to_ptr.vmem [resolvable:$true] %s61_s16 }
   0x6   :  { %s846_s19 = scalar_lea.hbm %s1289_s1, 128 }
   0x7   :  { %p847_p0 = scmp.ne.s32.totalorder %s1289_s1, %s846_s19  ;;  %p850_p1 = scmp.lt.u32.totalorder %s846_s19, %s1289_s1 }
   0x9   :  { %p852_p2 = pnand %p850_p1, %p847_p0 }
   0xb   :  { %855 = shalt.err (!%p852_p2)
}
   0xc   :  { %s856_s24 = scalar_lea.vmem %s38_s14, 128  ;;  %p861_p4 = scmp.lt.s32.totalorder %s38_s14, %s38_s14 }
   0xd   :  { %p857_p3 = scmp.ne.s32.totalorder %s38_s14, %s856_s24  ;;  %p862_p5 = scmp.lt.s32.totalorder %s856_s24, %s856_s24 }
   0xf   :  { %p863_p6 = por %p862_p5, %p861_p4 }
  0x11   :  { %p864_p7 = pnand %p863_p6, %p857_p3 }
  0x13   :  { %867 = shalt.err (!%p864_p7)
}
  0x14   :  { %s1034_s25 = smov 64   ;;  %s1035_s26 = smov 4  }
  0x15   :  { %43 = dma.hbm_to_vmem [thread:$0]  %s1289_s1, 128, %s38_s14, [#allocation7], %s1034_s25, %s1034_s25, %s1035_s26  }
  0x16   :  { %s868_s11 = scalar_lea.hbm %s1291_s3, 1024 }
  0x17   :  { %p869_p8 = scmp.ne.s32.totalorder %s1291_s3, %s868_s11  ;;  %p872_p9 = scmp.lt.u32.totalorder %s868_s11, %s1291_s3 }
  0x19   :  { %p874_p10 = pnand %p872_p9, %p869_p8 }
  0x1b   :  { %877 = shalt.err (!%p874_p10)
}
  0x1c   :  { %s878_s18 = scalar_lea.vmem %s1101_s16, 1024  ;;  %p883_p12 = scmp.lt.s32.totalorder %s1101_s16, %s1101_s16 }
  0x1d   :  { %p879_p11 = scmp.ne.s32.totalorder %s1101_s16, %s878_s18  ;;  %p884_p13 = scmp.lt.s32.totalorder %s878_s18, %s878_s18 }
  0x1f   :  { %p885_p0 = por %p884_p13, %p883_p12 }
  0x21   :  { %p886_p1 = pnand %p885_p0, %p879_p11 }
  0x23   :  { %889 = shalt.err (!%p886_p1)
}
  0x24   :  { %67 = dma.hbm_to_vmem [thread:$0]  %s1291_s3, 1024, %s1101_s16, [#allocation10], %s1034_s25, %s1034_s25, %s1035_s26  }
  0x25   :  { %s1036_s19 = smov [#allocation12]   ;;  %s1037_s21 = smov [#allocation3]  }
  0x26   :  { %s89_s20 = sshll.u32 %s1036_s19, 4  ;;  %s25_s22 = sshll.u32 %s1037_s21, 4  ;;  %s90_s20 = int_to_ptr.vmem [resolvable:$true] %s89_s20  ;;  %s1138_s22 = int_to_ptr.vmem [resolvable:$true] %s25_s22 }
  0x27   :  { %s890_s27 = scalar_lea.hbm %s1295_s7, 1024 }
  0x28   :  { %p891_p2 = scmp.ne.s32.totalorder %s1295_s7, %s890_s27  ;;  %p894_p3 = scmp.lt.u32.totalorder %s890_s27, %s1295_s7 }
  0x2a   :  { %p896_p4 = pnand %p894_p3, %p891_p2 }
  0x2c   :  { %899 = shalt.err (!%p896_p4)
}
  0x2d   :  { %s900_s3 = scalar_lea.vmem %s90_s20, 1024  ;;  %p905_p6 = scmp.lt.s32.totalorder %s90_s20, %s90_s20 }
  0x2e   :  { %p901_p5 = scmp.ne.s32.totalorder %s90_s20, %s900_s3  ;;  %p906_p7 = scmp.lt.s32.totalorder %s900_s3, %s900_s3 }
  0x30   :  { %p907_p8 = por %p906_p7, %p905_p6 }
  0x32   :  { %p908_p9 = pnand %p907_p8, %p901_p5 }
  0x34   :  { %911 = shalt.err (!%p908_p9)
}
  0x35   :  { %95 = dma.hbm_to_vmem [thread:$0]  %s1295_s7, 1024, %s90_s20, [#allocation13], %s1034_s25, %s1034_s25, %s1035_s26  }
  0x36   :  { %s912_s17 = scalar_lea.hbm %s1288_s0, 128 }
  0x37   :  { %p913_p10 = scmp.ne.s32.totalorder %s1288_s0, %s912_s17  ;;  %p916_p11 = scmp.lt.u32.totalorder %s912_s17, %s1288_s0 }
  0x39   :  { %p918_p12 = pnand %p916_p11, %p913_p10 }
  0x3b   :  { %921 = shalt.err (!%p918_p12)
}
  0x3c   :  { %s922_s21 = scalar_lea.vmem %s1138_s22, 128  ;;  %p927_p0 = scmp.lt.s32.totalorder %s1138_s22, %s1138_s22 }
  0x3d   :  { %p923_p13 = scmp.ne.s32.totalorder %s1138_s22, %s922_s21  ;;  %p928_p1 = scmp.lt.s32.totalorder %s922_s21, %s922_s21 }
  0x3f   :  { %p929_p2 = por %p928_p1, %p927_p0 }
  0x41   :  { %p930_p3 = pnand %p929_p2, %p923_p13 }
  0x43   :  { %933 = shalt.err (!%p930_p3)
}
  0x44   :  { %31 = dma.hbm_to_vmem [thread:$0]  %s1288_s0, 128, %s1138_s22, [#allocation4], %s1034_s25, %s1034_s25, %s1035_s26  }
  0x45   :  { %s1038_s23 = smov [#allocation8]   ;;  %s1039_s27 = smov [#allocation11]  }
  0x46   :  { %s49_s24 = sshll.u32 %s1038_s23, 4  ;;  %s75_s28 = sshll.u32 %s1039_s27, 4  ;;  %s50_s24 = int_to_ptr.vmem [resolvable:$true] %s49_s24  ;;  %s1175_s28 = int_to_ptr.vmem [resolvable:$true] %s75_s28 }
  0x47   :  { %s934_s11 = scalar_lea.hbm %s1290_s2, 128 }
  0x48   :  { %p935_p4 = scmp.ne.s32.totalorder %s1290_s2, %s934_s11  ;;  %p938_p5 = scmp.lt.u32.totalorder %s934_s11, %s1290_s2 }
  0x4a   :  { %p940_p6 = pnand %p938_p5, %p935_p4 }
  0x4c   :  { %943 = shalt.err (!%p940_p6)
}
  0x4d   :  { %s944_s0 = scalar_lea.vmem %s50_s24, 128  ;;  %p949_p8 = scmp.lt.s32.totalorder %s50_s24, %s50_s24 }
  0x4e   :  { %p945_p7 = scmp.ne.s32.totalorder %s50_s24, %s944_s0  ;;  %p950_p9 = scmp.lt.s32.totalorder %s944_s0, %s944_s0 }
  0x50   :  { %p951_p10 = por %p950_p9, %p949_p8 }
  0x52   :  { %p952_p11 = pnand %p951_p10, %p945_p7 }
  0x54   :  { %955 = shalt.err (!%p952_p11)
}
  0x55   :  { %55 = dma.hbm_to_vmem [thread:$0]  %s1290_s2, 128, %s50_s24, [#allocation7], %s1034_s25, %s1034_s25, %s1035_s26  }
  0x56   :  { %s956_s1 = scalar_lea.hbm %s1293_s5, 1024 }
  0x57   :  { %p957_p12 = scmp.ne.s32.totalorder %s1293_s5, %s956_s1  ;;  %p960_p13 = scmp.lt.u32.totalorder %s956_s1, %s1293_s5 }
  0x59   :  { %p962_p0 = pnand %p960_p13, %p957_p12 }
  0x5b   :  { %965 = shalt.err (!%p962_p0)
}
  0x5c   :  { %s966_s20 = scalar_lea.vmem %s1175_s28, 1024  ;;  %p971_p2 = scmp.lt.s32.totalorder %s1175_s28, %s1175_s28 }
  0x5d   :  { %p967_p1 = scmp.ne.s32.totalorder %s1175_s28, %s966_s20  ;;  %p972_p3 = scmp.lt.s32.totalorder %s966_s20, %s966_s20 }
  0x5f   :  { %p973_p4 = por %p972_p3, %p971_p2 }
  0x61   :  { %p974_p5 = pnand %p973_p4, %p967_p1 }
  0x63   :  { %977 = shalt.err (!%p974_p5)
}
  0x64   :  { %81 = dma.hbm_to_vmem [thread:$0]  %s1293_s5, 1024, %s1175_s28, [#allocation10], %s1034_s25, %s1034_s25, %s1035_s26  }
  0x65   :  { %s1040_s24 = smov [#allocation14]   ;;  %s978_s11 = scalar_lea.hbm %s1296_s8, 1024 }
  0x66   :  { %s101_s27 = sshll.u32 %s1040_s24, 4  ;;  %p979_p6 = scmp.ne.s32.totalorder %s1296_s8, %s978_s11  ;;  %s102_s27 = int_to_ptr.vmem [resolvable:$true] %s101_s27 }
  0x67   :  { %p982_p7 = scmp.lt.u32.totalorder %s978_s11, %s1296_s8 }
  0x69   :  { %p984_p8 = pnand %p982_p7, %p979_p6 }
  0x6b   :  { %987 = shalt.err (!%p984_p8)
}
  0x6c   :  { %s988_s0 = scalar_lea.vmem %s102_s27, 1024  ;;  %p993_p10 = scmp.lt.s32.totalorder %s102_s27, %s102_s27 }
  0x6d   :  { %p989_p9 = scmp.ne.s32.totalorder %s102_s27, %s988_s0  ;;  %p994_p11 = scmp.lt.s32.totalorder %s988_s0, %s988_s0 }
  0x6f   :  { %p995_p12 = por %p994_p11, %p993_p10 }
  0x71   :  { %p996_p13 = pnand %p995_p12, %p989_p9 }
  0x73   :  { %999 = shalt.err (!%p996_p13)
}
  0x74   :  { %107 = dma.hbm_to_vmem [thread:$0]  %s1296_s8, 1024, %s102_s27, [#allocation13], %s1034_s25, %s1034_s25, %s1035_s26  }
  0x75   :  { %1022 = dma.done.wait [#allocation4], 128  }
  0x76   :  { %1023 = vsyncadd [#allocation4], 4294967168 }
  0x77   :  { %1024 = dma.done.wait [#allocation7], 256  }
  0x78   :  { %1025 = vsyncadd [#allocation7], 4294967040 }
  0x79   :  { %1026 = dma.done.wait [#allocation10], 2048  }
  0x7a   :  { %1027 = vsyncadd [#allocation10], 4294965248 }
  0x7b   :  { %1028 = dma.done.wait [#allocation13], 2048  }
  0x7c   :  { %1029 = vsyncadd [#allocation13], 4294965248  ;;  %v1041_v0 = vmov 0.0   ;;  %vm1042_vm0 = vmmov 0   ;;  %v812_v1 = vld [vmem:[#allocation9] sm:$0xff]   ;;  %v814_v3 = vld [vmem:[#allocation9 + $0x8] sm:$0xff]  }
  0x7d   :  { %718 = vmatprep.subr.bf16.mxu0 %v1041_v0  ;;  %738 = vmatprep.subr.bf16.mxu1 %v1041_v0  ;;  %v813_v2 = vld [vmem:[#allocation11] sm:$0xff]   ;;  %v815_v4 = vld [vmem:[#allocation11 + $0x8] sm:$0xff]   ;;  %v816_v5 = vld [vmem:[#allocation9 + $0x10] sm:$0xff]   ;;  %s1043_s15 = smov [#allocation15]  }
  0x7e   :  { %734 = vmatprep.mubr.msk.bf16.mxu0 %vm1042_vm0, %v1041_v0  ;;  %754 = vmatprep.mubr.msk.bf16.mxu1 %vm1042_vm0, %v1041_v0  ;;  %v817_v6 = vld [vmem:[#allocation11 + $0x10] sm:$0xff]   ;;  %v818_v7 = vld [vmem:[#allocation9 + $0x18] sm:$0xff]   ;;  %v820_v9 = vld [vmem:[#allocation9 + $0x20] sm:$0xff]   ;;  %s626_s17 = sshll.u32 %s1043_s15, 4  ;;  %s627_s17 = int_to_ptr.vmem [resolvable:$true] %s626_s17 }
  0x7f   :  { %719 = vmatpush3.bf16.msra.mxu0 %v812_v1  ;;  %739 = vmatpush3.bf16.msra.mxu1 %v813_v2  ;;  %v819_v8 = vld [vmem:[#allocation11 + $0x18] sm:$0xff]   ;;  %v821_v10 = vld [vmem:[#allocation11 + $0x20] sm:$0xff]   ;;  %v822_v11 = vld [vmem:[#allocation9 + $0x28] sm:$0xff]   ;;  %s1000_s18 = scalar_lea.vmem %s627_s17, 256  ;;  %p1005_p1 = scmp.lt.s32.totalorder %s627_s17, %s627_s17 }
  0x80   :  { %720 = vmatprep.subr.bf16.mxu0 %v1041_v0  ;;  %740 = vmatprep.subr.bf16.mxu1 %v1041_v0  ;;  %v823_v12 = vld [vmem:[#allocation11 + $0x28] sm:$0xff]   ;;  %v824_v13 = vld [vmem:[#allocation9 + $0x30] sm:$0xff]   ;;  %v826_v15 = vld [vmem:[#allocation9 + $0x38] sm:$0xff]   ;;  %p1001_p0 = scmp.ne.s32.totalorder %s627_s17, %s1000_s18  ;;  %p1006_p2 = scmp.lt.s32.totalorder %s1000_s18, %s1000_s18 }
  0x81   :  { %v825_v14 = vld [vmem:[#allocation11 + $0x30] sm:$0xff]   ;;  %v827_v16 = vld [vmem:[#allocation11 + $0x38] sm:$0xff]   ;;  %v828_v17 = vld [vmem:[#allocation3] sm:$0xff]  }
  0x82   :  { %v829_v18 = vld [vmem:[#allocation6] sm:$0xff]   ;;  %v831_v19 = vld [vmem:[#allocation12] sm:$0xff]   ;;  %v833_v21 = vld [vmem:[#allocation12 + $0x8] sm:$0xff]   ;;  %p1007_p3 = por %p1006_p2, %p1005_p1 }
  0x83   :  { %721 = vmatpush3.bf16.msra.mxu0 %v814_v3  ;;  %741 = vmatpush3.bf16.msra.mxu1 %v815_v4  ;;  %v830_v20 = vld [vmem:[#allocation14] sm:$0xff]   ;;  %v832_v22 = vld [vmem:[#allocation14 + $0x8] sm:$0xff]   ;;  %v835_v23 = vld [vmem:[#allocation12 + $0x10] sm:$0xff]  }
  0x84   :  { %722 = vmatprep.subr.bf16.mxu0 %v1041_v0  ;;  %742 = vmatprep.subr.bf16.mxu1 %v1041_v0  ;;  %v834_v24 = vld [vmem:[#allocation14 + $0x10] sm:$0xff]   ;;  %v837_v25 = vld [vmem:[#allocation12 + $0x18] sm:$0xff]   ;;  %v839_v27 = vld [vmem:[#allocation12 + $0x20] sm:$0xff]   ;;  %p1008_p4 = pnand %p1007_p3, %p1001_p0 }
  0x85   :  { %v836_v26 = vld [vmem:[#allocation14 + $0x18] sm:$0xff]   ;;  %v838_v28 = vld [vmem:[#allocation14 + $0x20] sm:$0xff]   ;;  %v841_v29 = vld [vmem:[#allocation12 + $0x28] sm:$0xff]  }
  0x86   :  { %v840_v30 = vld [vmem:[#allocation14 + $0x28] sm:$0xff]   ;;  %v842_v31 = vld [vmem:[#allocation14 + $0x30] sm:$0xff]   ;;  %v844_v33 = vld [vmem:[#allocation14 + $0x38] sm:$0xff]  }
  0x87   :  { %723 = vmatpush3.bf16.msra.mxu0 %v816_v5  ;;  %743 = vmatpush3.bf16.msra.mxu1 %v817_v6  ;;  %v843_v32 = vld [vmem:[#allocation12 + $0x30] sm:$0xff]   ;;  %v845_v34 = vld [vmem:[#allocation12 + $0x38] sm:$0xff]   ;;  %v641_v35 = vld [vmem:[%s1292_s4] ss:$0 sm:$0xff] }
  0x88   :  { %724 = vmatprep.subr.bf16.mxu0 %v1041_v0  ;;  %744 = vmatprep.subr.bf16.mxu1 %v1041_v0  ;;  %v651_v36 = vld [vmem:[%s1294_s6] ss:$0 sm:$0xff]  ;;  %v679_v56 = vld [vmem:[#allocation8] sm:$0xff]  }
  0x89   :  { %v677_v58 = vld [vmem:[%s1297_s9] ss:$0 sm:$0xff]  ;;  %v680_v60 = vunpack.c.l.bf16 %v679_v56  ;;  %v681_v1 = vunpack.c.h.bf16 %v679_v56 }
  0x8b   :  { %725 = vmatpush3.bf16.msra.mxu0 %v818_v7  ;;  %745 = vmatpush3.bf16.msra.mxu1 %v819_v8 }
  0x8c   :  { %726 = vmatprep.subr.bf16.mxu0 %v1041_v0  ;;  %746 = vmatprep.subr.bf16.mxu1 %v1041_v0 }
  0x8f   :  { %727 = vmatpush3.bf16.msra.mxu0 %v820_v9  ;;  %747 = vmatpush3.bf16.msra.mxu1 %v821_v10 }
  0x90   :  { %728 = vmatprep.subr.bf16.mxu0 %v1041_v0  ;;  %748 = vmatprep.subr.bf16.mxu1 %v1041_v0 }
  0x93   :  { %729 = vmatpush3.bf16.msra.mxu0 %v822_v11  ;;  %749 = vmatpush3.bf16.msra.mxu1 %v823_v12 }
  0x94   :  { %730 = vmatprep.subr.bf16.mxu0 %v1041_v0  ;;  %750 = vmatprep.subr.bf16.mxu1 %v1041_v0 }
  0x97   :  { %731 = vmatpush3.bf16.msra.mxu0 %v824_v13  ;;  %751 = vmatpush3.bf16.msra.mxu1 %v825_v14 }
  0x98   :  { %732 = vmatprep.subr.bf16.mxu0 %v1041_v0  ;;  %752 = vmatprep.subr.bf16.mxu1 %v1041_v0 }
  0x9b   :  { %733 = vmatpush3.bf16.msra.mxu0 %v826_v15  ;;  %753 = vmatpush3.bf16.msra.mxu1 %v827_v16 }
  0x9c   :  { %758 = vmatprep.subr.bf16.mxu0 %v1041_v0  ;;  %778 = vmatprep.subr.bf16.mxu1 %v1041_v0 }
  0x9e   :  { %735 = vmatmul.mubr.bf16.vlgmr.msra.gmra.mrb[0].mxu0 %v828_v17  ;;  %755 = vmatmul.mubr.bf16.vlgmr.msra.gmra.mrb[0].mxu1 %v829_v18 }
  0x9f   :  { %759 = vmatpush3.bf16.msra.mxu0 %v831_v19  ;;  %779 = vmatpush3.bf16.msra.mxu1 %v830_v20 }
  0xa0   :  { %760 = vmatprep.subr.bf16.mxu0 %v1041_v0  ;;  %780 = vmatprep.subr.bf16.mxu1 %v1041_v0 }
  0xa1   :  { %794 = vmatprep.mubr.msk.bf16.mxu1 %vm1042_vm0, %v1041_v0  ;;  %774 = vmatprep.mubr.msk.bf16.mxu0 %vm1042_vm0, %v1041_v0 }
  0xa3   :  { %761 = vmatpush3.bf16.msra.mxu0 %v833_v21  ;;  %781 = vmatpush3.bf16.msra.mxu1 %v832_v22 }
  0xa4   :  { %762 = vmatprep.subr.bf16.mxu0 %v1041_v0  ;;  %782 = vmatprep.subr.bf16.mxu1 %v1041_v0 }
  0xa7   :  { %763 = vmatpush3.bf16.msra.mxu0 %v835_v23  ;;  %783 = vmatpush3.bf16.msra.mxu1 %v834_v24 }
  0xa8   :  { %764 = vmatprep.subr.bf16.mxu0 %v1041_v0  ;;  %784 = vmatprep.subr.bf16.mxu1 %v1041_v0 }
  0xab   :  { %765 = vmatpush3.bf16.msra.mxu0 %v837_v25  ;;  %785 = vmatpush3.bf16.msra.mxu1 %v836_v26 }
  0xac   :  { %766 = vmatprep.subr.bf16.mxu0 %v1041_v0  ;;  %786 = vmatprep.subr.bf16.mxu1 %v1041_v0 }
  0xaf   :  { %767 = vmatpush3.bf16.msra.mxu0 %v839_v27  ;;  %787 = vmatpush3.bf16.msra.mxu1 %v838_v28 }
  0xb0   :  { %768 = vmatprep.subr.bf16.mxu0 %v1041_v0  ;;  %788 = vmatprep.subr.bf16.mxu1 %v1041_v0 }
  0xb3   :  { %769 = vmatpush3.bf16.msra.mxu0 %v841_v29  ;;  %789 = vmatpush3.bf16.msra.mxu1 %v840_v30 }
  0xb4   :  { %770 = vmatprep.subr.bf16.mxu0 %v1041_v0  ;;  %790 = vmatprep.subr.bf16.mxu1 %v1041_v0 }
  0xb7   :  { %791 = vmatpush3.bf16.msra.mxu1 %v842_v31  ;;  %771 = vmatpush3.bf16.msra.mxu0 %v843_v32 }
  0xb8   :  { %792 = vmatprep.subr.bf16.mxu1 %v1041_v0  ;;  %772 = vmatprep.subr.bf16.mxu0 %v1041_v0 }
  0xbb   :  { %793 = vmatpush3.bf16.msra.mxu1 %v844_v33  ;;  %773 = vmatpush3.bf16.msra.mxu0 %v845_v34 }
  0xbe   :  { %795 = vmatmul.mubr.bf16.vlgmr.msra.gmra.mrb[4].mxu1 %v828_v17 }
 0x171   :  { %v253_v37 = vpop.f32.mrb[0].mxu0  ;;  %v371_v39 = vpop.f32.mrb[0].mxu1 }
 0x172   :  { %v254_v38 = vadd.f32 %v641_v35, %v253_v37  ;;  %v736_v40 = vpop.f32.mrb[1].mxu0  ;;  %v372_v41 = vadd.f32 %v651_v36, %v371_v39  ;;  %v756_v42 = vpop.f32.mrb[1].mxu1 }
 0x173   :  { %v256_v43 = vpop.f32.mrb[2].mxu0  ;;  %v374_v45 = vpop.f32.mrb[2].mxu1 }
 0x174   :  { %v257_v44 = vadd.f32 %v641_v35, %v256_v43  ;;  %v737_v46 = vpop.f32.mrb[3].mxu0  ;;  %v378_v47 = vmul.f32 %v372_v41, %v254_v38  ;;  %v375_v48 = vadd.f32 %v651_v36, %v374_v45  ;;  %v757_v49 = vpop.f32.mrb[3].mxu1 }
 0x176   :  { %v379_v50 = vmul.f32 %v375_v48, %v257_v44 }
 0x178   :  { %v382_v51 = vpack.c.bf16 %v379_v50, %v378_v47 }
 0x17a   :  { %775 = vmatmul.mubr.bf16.vlgmr.msra.gmra.mrb[4].mxu0 %v382_v51 }
 0x191   :  { %v595_v52 = vpop.f32.mrb[4].mxu1 }
 0x192   :  { %v796_v53 = vpop.f32.mrb[5].mxu1 }
 0x193   :  { %v598_v54 = vpop.f32.mrb[6].mxu1 }
 0x194   :  { %v797_v55 = vpop.f32.mrb[7].mxu1 }
 0x24d   :  { %v481_v57 = vpop.f32.mrb[4].mxu0 }
 0x24e   :  { %v602_v59 = vadd.f32 %v595_v52, %v481_v57  ;;  %v776_v61 = vpop.f32.mrb[5].mxu0 }
 0x24f   :  { %v484_v62 = vpop.f32.mrb[6].mxu0 }
 0x250   :  { %v611_v63 = vadd.f32 %v677_v58, %v602_v59  ;;  %v603_v0 = vadd.f32 %v598_v54, %v484_v62  ;;  %v777_v2 = vpop.f32.mrb[7].mxu0 }
 0x252   :  { %v617_v3 = vadd.f32 %v680_v60, %v611_v63  ;;  %v612_v4 = vadd.f32 %v677_v58, %v603_v0 }
 0x254   :  { %619 = vst [vmem:[#allocation15] sm:$0xff] %v617_v3  ;;  %v618_v5 = vadd.f32 %v681_v1, %v612_v4 }
 0x256   :  { %620 = vst [vmem:[#allocation15 + $0x8] sm:$0xff] %v618_v5 }
 0x257   :  { %1011 = shalt.err (!%p1008_p4)
}
 0x258   :  { %s1012_s14 = scalar_lea.hbm %s1298_s10, 256 }
 0x259   :  { %p1013_p5 = scmp.ne.s32.totalorder %s1298_s10, %s1012_s14  ;;  %p1016_p6 = scmp.lt.u32.totalorder %s1012_s14, %s1298_s10 }
 0x25b   :  { %p1018_p7 = pnand %p1016_p6, %p1013_p5 }
 0x25d   :  { %1021 = shalt.err (!%p1018_p7)
}
 0x25e   :  { %s1044_s2 = smov 128   ;;  %s1045_s23 = smov 8  }
 0x25f   :  { %632 = dma.vmem_to_hbm [thread:$0]  %s627_s17, 256, %s1298_s10, [#allocation5], %s1044_s2, %s1044_s2, %s1045_s23  }
 0x260   :  { %1030 = dma.done.wait [#allocation5], 256  }
 0x261   :  { %1031 = vsyncadd [#allocation5], 4294967040 }
 0x262   :  { %636 = vsyncpa [#allocation4], 1 }
 0x263   :  { %637 = vsyncpa [#allocation7], 1 }
 0x264   :  { %638 = vsyncpa [#allocation10], 1 }
 0x265   :  { %639 = vsyncpa [#allocation13], 1 }
 0x266   :  { %640 = vsyncpa [#allocation5], 1 }

// kernel: tpu_custom_call.1
= control target key start
LH: loop header
LB: loop body
LE: loop exit
PB: predicated region body
PF: predicated region fallthrough
CT: control target
= control target key end

     0   :  { %15 = vsyncpa [#allocation4], 0  ;;  %s1288_s0 = inlined_call_operand.hbm [shape: bf16[16,128], index: 0, kind: input, shape index: {}]   ;;  %s1289_s1 = inlined_call_operand.hbm [shape: bf16[16,128], index: 1, kind: input, shape index: {}]   ;;  %s1290_s2 = inlined_call_operand.hbm [shape: bf16[16,128], index: 2, kind: input, shape index: {}]   ;;  %s1291_s3 = inlined_call_operand.hbm [shape: bf16[128,128], index: 3, kind: input, shape index: {}]   ;;  %s1292_s4 = inlined_call_operand.vmem [shape: f32[1,128], index: 4, kind: input, shape index: {}]   ;;  %s1293_s5 = inlined_call_operand.hbm [shape: bf16[128,128], index: 5, kind: input, shape index: {}]   ;;  %s1294_s6 = inlined_call_operand.vmem [shape: f32[1,128], index: 6, kind: input, shape index: {}]   ;;  %s1295_s7 = inlined_call_operand.hbm [shape: bf16[128,128], index: 7, kind: input, shape index: {}]   ;;  %s1296_s8 = inlined_call_operand.hbm [shape: bf16[128,128], index: 8, kind: input, shape index: {}]   ;;  %s1297_s9 = inlined_call_operand.vmem [shape: f32[1,128], index: 9, kind: input, shape index: {}]   ;;  %s1298_s10 = inlined_call_operand.hbm [shape: f32[16,128], index: 10, kind: output, shape index: {}]  }
   0x1   :  { %16 = vsyncpa [#allocation7], 0 }
   0x2   :  { %17 = vsyncpa [#allocation10], 0 }
   0x3   :  { %18 = vsyncpa [#allocation13], 0 }
   0x4   :  { %19 = vsyncpa [#allocation5], 0  ;;  %s1032_s13 = smov [#allocation6]   ;;  %s1033_s15 = smov [#allocation9]  }
   0x5   :  { %s37_s14 = sshll.u32 %s1032_s13, 4  ;;  %s61_s16 = sshll.u32 %s1033_s15, 4  ;;  %s38_s14 = int_to_ptr.vmem [resolvable:$true] %s37_s14  ;;  %s1101_s16 = int_to_ptr.vmem [resolvable:$true] %s61_s16 }
   0x6   :  { %s846_s19 = scalar_lea.hbm %s1289_s1, 128 }
   0x7   :  { %p847_p0 = scmp.ne.s32.totalorder %s1289_s1, %s846_s19  ;;  %p850_p1 = scmp.lt.u32.totalorder %s846_s19, %s1289_s1 }
   0x9   :  { %p852_p2 = pnand %p850_p1, %p847_p0 }
   0xb   :  { %855 = shalt.err (!%p852_p2)
}
   0xc   :  { %s856_s24 = scalar_lea.vmem %s38_s14, 128  ;;  %p861_p4 = scmp.lt.s32.totalorder %s38_s14, %s38_s14 }
   0xd   :  { %p857_p3 = scmp.ne.s32.totalorder %s38_s14, %s856_s24  ;;  %p862_p5 = scmp.lt.s32.totalorder %s856_s24, %s856_s24 }
   0xf   :  { %p863_p6 = por %p862_p5, %p861_p4 }
  0x11   :  { %p864_p7 = pnand %p863_p6, %p857_p3 }
  0x13   :  { %867 = shalt.err (!%p864_p7)
}
  0x14   :  { %s1034_s25 = smov 64   ;;  %s1035_s26 = smov 4  }
  0x15   :  { %43 = dma.hbm_to_vmem [thread:$0]  %s1289_s1, 128, %s38_s14, [#allocation7], %s1034_s25, %s1034_s25, %s1035_s26  }
  0x16   :  { %s868_s11 = scalar_lea.hbm %s1291_s3, 1024 }
  0x17   :  { %p869_p8 = scmp.ne.s32.totalorder %s1291_s3, %s868_s11  ;;  %p872_p9 = scmp.lt.u32.totalorder %s868_s11, %s1291_s3 }
  0x19   :  { %p874_p10 = pnand %p872_p9, %p869_p8 }
  0x1b   :  { %877 = shalt.err (!%p874_p10)
}
  0x1c   :  { %s878_s18 = scalar_lea.vmem %s1101_s16, 1024  ;;  %p883_p12 = scmp.lt.s32.totalorder %s1101_s16, %s1101_s16 }
  0x1d   :  { %p879_p11 = scmp.ne.s32.totalorder %s1101_s16, %s878_s18  ;;  %p884_p13 = scmp.lt.s32.totalorder %s878_s18, %s878_s18 }
  0x1f   :  { %p885_p0 = por %p884_p13, %p883_p12 }
  0x21   :  { %p886_p1 = pnand %p885_p0, %p879_p11 }
  0x23   :  { %889 = shalt.err (!%p886_p1)
}
  0x24   :  { %67 = dma.hbm_to_vmem [thread:$0]  %s1291_s3, 1024, %s1101_s16, [#allocation10], %s1034_s25, %s1034_s25, %s1035_s26  }
  0x25   :  { %s1036_s19 = smov [#allocation12]   ;;  %s1037_s21 = smov [#allocation3]  }
  0x26   :  { %s89_s20 = sshll.u32 %s1036_s19, 4  ;;  %s25_s22 = sshll.u32 %s1037_s21, 4  ;;  %s90_s20 = int_to_ptr.vmem [resolvable:$true] %s89_s20  ;;  %s1138_s22 = int_to_ptr.vmem [resolvable:$true] %s25_s22 }
  0x27   :  { %s890_s27 = scalar_lea.hbm %s1295_s7, 1024 }
  0x28   :  { %p891_p2 = scmp.ne.s32.totalorder %s1295_s7, %s890_s27  ;;  %p894_p3 = scmp.lt.u32.totalorder %s890_s27, %s1295_s7 }
  0x2a   :  { %p896_p4 = pnand %p894_p3, %p891_p2 }
  0x2c   :  { %899 = shalt.err (!%p896_p4)
}
  0x2d   :  { %s900_s3 = scalar_lea.vmem %s90_s20, 1024  ;;  %p905_p6 = scmp.lt.s32.totalorder %s90_s20, %s90_s20 }
  0x2e   :  { %p901_p5 = scmp.ne.s32.totalorder %s90_s20, %s900_s3  ;;  %p906_p7 = scmp.lt.s32.totalorder %s900_s3, %s900_s3 }
  0x30   :  { %p907_p8 = por %p906_p7, %p905_p6 }
  0x32   :  { %p908_p9 = pnand %p907_p8, %p901_p5 }
  0x34   :  { %911 = shalt.err (!%p908_p9)
}
  0x35   :  { %95 = dma.hbm_to_vmem [thread:$0]  %s1295_s7, 1024, %s90_s20, [#allocation13], %s1034_s25, %s1034_s25, %s1035_s26  }
  0x36   :  { %s912_s17 = scalar_lea.hbm %s1288_s0, 128 }
  0x37   :  { %p913_p10 = scmp.ne.s32.totalorder %s1288_s0, %s912_s17  ;;  %p916_p11 = scmp.lt.u32.totalorder %s912_s17, %s1288_s0 }
  0x39   :  { %p918_p12 = pnand %p916_p11, %p913_p10 }
  0x3b   :  { %921 = shalt.err (!%p918_p12)
}
  0x3c   :  { %s922_s21 = scalar_lea.vmem %s1138_s22, 128  ;;  %p927_p0 = scmp.lt.s32.totalorder %s1138_s22, %s1138_s22 }
  0x3d   :  { %p923_p13 = scmp.ne.s32.totalorder %s1138_s22, %s922_s21  ;;  %p928_p1 = scmp.lt.s32.totalorder %s922_s21, %s922_s21 }
  0x3f   :  { %p929_p2 = por %p928_p1, %p927_p0 }
  0x41   :  { %p930_p3 = pnand %p929_p2, %p923_p13 }
  0x43   :  { %933 = shalt.err (!%p930_p3)
}
  0x44   :  { %31 = dma.hbm_to_vmem [thread:$0]  %s1288_s0, 128, %s1138_s22, [#allocation4], %s1034_s25, %s1034_s25, %s1035_s26  }
  0x45   :  { %s1038_s23 = smov [#allocation8]   ;;  %s1039_s27 = smov [#allocation11]  }
  0x46   :  { %s49_s24 = sshll.u32 %s1038_s23, 4  ;;  %s75_s28 = sshll.u32 %s1039_s27, 4  ;;  %s50_s24 = int_to_ptr.vmem [resolvable:$true] %s49_s24  ;;  %s1175_s28 = int_to_ptr.vmem [resolvable:$true] %s75_s28 }
  0x47   :  { %s934_s11 = scalar_lea.hbm %s1290_s2, 128 }
  0x48   :  { %p935_p4 = scmp.ne.s32.totalorder %s1290_s2, %s934_s11  ;;  %p938_p5 = scmp.lt.u32.totalorder %s934_s11, %s1290_s2 }
  0x4a   :  { %p940_p6 = pnand %p938_p5, %p935_p4 }
  0x4c   :  { %943 = shalt.err (!%p940_p6)
}
  0x4d   :  { %s944_s0 = scalar_lea.vmem %s50_s24, 128  ;;  %p949_p8 = scmp.lt.s32.totalorder %s50_s24, %s50_s24 }
  0x4e   :  { %p945_p7 = scmp.ne.s32.totalorder %s50_s24, %s944_s0  ;;  %p950_p9 = scmp.lt.s32.totalorder %s944_s0, %s944_s0 }
  0x50   :  { %p951_p10 = por %p950_p9, %p949_p8 }
  0x52   :  { %p952_p11 = pnand %p951_p10, %p945_p7 }
  0x54   :  { %955 = shalt.err (!%p952_p11)
}
  0x55   :  { %55 = dma.hbm_to_vmem [thread:$0]  %s1290_s2, 128, %s50_s24, [#allocation7], %s1034_s25, %s1034_s25, %s1035_s26  }
  0x56   :  { %s956_s1 = scalar_lea.hbm %s1293_s5, 1024 }
  0x57   :  { %p957_p12 = scmp.ne.s32.totalorder %s1293_s5, %s956_s1  ;;  %p960_p13 = scmp.lt.u32.totalorder %s956_s1, %s1293_s5 }
  0x59   :  { %p962_p0 = pnand %p960_p13, %p957_p12 }
  0x5b   :  { %965 = shalt.err (!%p962_p0)
}
  0x5c   :  { %s966_s20 = scalar_lea.vmem %s1175_s28, 1024  ;;  %p971_p2 = scmp.lt.s32.totalorder %s1175_s28, %s1175_s28 }
  0x5d   :  { %p967_p1 = scmp.ne.s32.totalorder %s1175_s28, %s966_s20  ;;  %p972_p3 = scmp.lt.s32.totalorder %s966_s20, %s966_s20 }
  0x5f   :  { %p973_p4 = por %p972_p3, %p971_p2 }
  0x61   :  { %p974_p5 = pnand %p973_p4, %p967_p1 }
  0x63   :  { %977 = shalt.err (!%p974_p5)
}
  0x64   :  { %81 = dma.hbm_to_vmem [thread:$0]  %s1293_s5, 1024, %s1175_s28, [#allocation10], %s1034_s25, %s1034_s25, %s1035_s26  }
  0x65   :  { %s1040_s24 = smov [#allocation14]   ;;  %s978_s11 = scalar_lea.hbm %s1296_s8, 1024 }
  0x66   :  { %s101_s27 = sshll.u32 %s1040_s24, 4  ;;  %p979_p6 = scmp.ne.s32.totalorder %s1296_s8, %s978_s11  ;;  %s102_s27 = int_to_ptr.vmem [resolvable:$true] %s101_s27 }
  0x67   :  { %p982_p7 = scmp.lt.u32.totalorder %s978_s11, %s1296_s8 }
  0x69   :  { %p984_p8 = pnand %p982_p7, %p979_p6 }
  0x6b   :  { %987 = shalt.err (!%p984_p8)
}
  0x6c   :  { %s988_s0 = scalar_lea.vmem %s102_s27, 1024  ;;  %p993_p10 = scmp.lt.s32.totalorder %s102_s27, %s102_s27 }
  0x6d   :  { %p989_p9 = scmp.ne.s32.totalorder %s102_s27, %s988_s0  ;;  %p994_p11 = scmp.lt.s32.totalorder %s988_s0, %s988_s0 }
  0x6f   :  { %p995_p12 = por %p994_p11, %p993_p10 }
  0x71   :  { %p996_p13 = pnand %p995_p12, %p989_p9 }
  0x73   :  { %999 = shalt.err (!%p996_p13)
}
  0x74   :  { %107 = dma.hbm_to_vmem [thread:$0]  %s1296_s8, 1024, %s102_s27, [#allocation13], %s1034_s25, %s1034_s25, %s1035_s26  }
  0x75   :  { %1022 = dma.done.wait [#allocation4], 128  }
  0x76   :  { %1023 = vsyncadd [#allocation4], 4294967168 }
  0x77   :  { %1024 = dma.done.wait [#allocation7], 256  }
  0x78   :  { %1025 = vsyncadd [#allocation7], 4294967040 }
  0x79   :  { %1026 = dma.done.wait [#allocation10], 2048  }
  0x7a   :  { %1027 = vsyncadd [#allocation10], 4294965248 }
  0x7b   :  { %1028 = dma.done.wait [#allocation13], 2048  }
  0x7c   :  { %1029 = vsyncadd [#allocation13], 4294965248  ;;  %v1041_v0 = vmov 0.0   ;;  %vm1042_vm0 = vmmov 0   ;;  %v812_v1 = vld [vmem:[#allocation9] sm:$0xff]   ;;  %v814_v3 = vld [vmem:[#allocation9 + $0x8] sm:$0xff]  }
  0x7d   :  { %718 = vmatprep.subr.bf16.mxu0 %v1041_v0  ;;  %738 = vmatprep.subr.bf16.mxu1 %v1041_v0  ;;  %v813_v2 = vld [vmem:[#allocation11] sm:$0xff]   ;;  %v815_v4 = vld [vmem:[#allocation11 + $0x8] sm:$0xff]   ;;  %v816_v5 = vld [vmem:[#allocation9 + $0x10] sm:$0xff]   ;;  %s1043_s15 = smov [#allocation15]  }
  0x7e   :  { %734 = vmatprep.mubr.msk.bf16.mxu0 %vm1042_vm0, %v1041_v0  ;;  %754 = vmatprep.mubr.msk.bf16.mxu1 %vm1042_vm0, %v1041_v0  ;;  %v817_v6 = vld [vmem:[#allocation11 + $0x10] sm:$0xff]   ;;  %v818_v7 = vld [vmem:[#allocation9 + $0x18] sm:$0xff]   ;;  %v820_v9 = vld [vmem:[#allocation9 + $0x20] sm:$0xff]   ;;  %s626_s17 = sshll.u32 %s1043_s15, 4  ;;  %s627_s17 = int_to_ptr.vmem [resolvable:$true] %s626_s17 }
  0x7f   :  { %719 = vmatpush3.bf16.msra.mxu0 %v812_v1  ;;  %739 = vmatpush3.bf16.msra.mxu1 %v813_v2  ;;  %v819_v8 = vld [vmem:[#allocation11 + $0x18] sm:$0xff]   ;;  %v821_v10 = vld [vmem:[#allocation11 + $0x20] sm:$0xff]   ;;  %v822_v11 = vld [vmem:[#allocation9 + $0x28] sm:$0xff]   ;;  %s1000_s18 = scalar_lea.vmem %s627_s17, 256  ;;  %p1005_p1 = scmp.lt.s32.totalorder %s627_s17, %s627_s17 }
  0x80   :  { %720 = vmatprep.subr.bf16.mxu0 %v1041_v0  ;;  %740 = vmatprep.subr.bf16.mxu1 %v1041_v0  ;;  %v823_v12 = vld [vmem:[#allocation11 + $0x28] sm:$0xff]   ;;  %v824_v13 = vld [vmem:[#allocation9 + $0x30] sm:$0xff]   ;;  %v826_v15 = vld [vmem:[#allocation9 + $0x38] sm:$0xff]   ;;  %p1001_p0 = scmp.ne.s32.totalorder %s627_s17, %s1000_s18  ;;  %p1006_p2 = scmp.lt.s32.totalorder %s1000_s18, %s1000_s18 }
  0x81   :  { %v825_v14 = vld [vmem:[#allocation11 + $0x30] sm:$0xff]   ;;  %v827_v16 = vld [vmem:[#allocation11 + $0x38] sm:$0xff]   ;;  %v828_v17 = vld [vmem:[#allocation3] sm:$0xff]  }
  0x82   :  { %v829_v18 = vld [vmem:[#allocation6] sm:$0xff]   ;;  %v831_v19 = vld [vmem:[#allocation12] sm:$0xff]   ;;  %v833_v21 = vld [vmem:[#allocation12 + $0x8] sm:$0xff]   ;;  %p1007_p3 = por %p1006_p2, %p1005_p1 }
  0x83   :  { %721 = vmatpush3.bf16.msra.mxu0 %v814_v3  ;;  %741 = vmatpush3.bf16.msra.mxu1 %v815_v4  ;;  %v830_v20 = vld [vmem:[#allocation14] sm:$0xff]   ;;  %v832_v22 = vld [vmem:[#allocation14 + $0x8] sm:$0xff]   ;;  %v835_v23 = vld [vmem:[#allocation12 + $0x10] sm:$0xff]  }
  0x84   :  { %722 = vmatprep.subr.bf16.mxu0 %v1041_v0  ;;  %742 = vmatprep.subr.bf16.mxu1 %v1041_v0  ;;  %v834_v24 = vld [vmem:[#allocation14 + $0x10] sm:$0xff]   ;;  %v837_v25 = vld [vmem:[#allocation12 + $0x18] sm:$0xff]   ;;  %v839_v27 = vld [vmem:[#allocation12 + $0x20] sm:$0xff]   ;;  %p1008_p4 = pnand %p1007_p3, %p1001_p0 }
  0x85   :  { %v836_v26 = vld [vmem:[#allocation14 + $0x18] sm:$0xff]   ;;  %v838_v28 = vld [vmem:[#allocation14 + $0x20] sm:$0xff]   ;;  %v841_v29 = vld [vmem:[#allocation12 + $0x28] sm:$0xff]  }
  0x86   :  { %v840_v30 = vld [vmem:[#allocation14 + $0x28] sm:$0xff]   ;;  %v842_v31 = vld [vmem:[#allocation14 + $0x30] sm:$0xff]   ;;  %v844_v33 = vld [vmem:[#allocation14 + $0x38] sm:$0xff]  }
  0x87   :  { %723 = vmatpush3.bf16.msra.mxu0 %v816_v5  ;;  %743 = vmatpush3.bf16.msra.mxu1 %v817_v6  ;;  %v843_v32 = vld [vmem:[#allocation12 + $0x30] sm:$0xff]   ;;  %v845_v34 = vld [vmem:[#allocation12 + $0x38] sm:$0xff]   ;;  %v641_v35 = vld [vmem:[%s1292_s4] ss:$0 sm:$0xff] }
  0x88   :  { %724 = vmatprep.subr.bf16.mxu0 %v1041_v0  ;;  %744 = vmatprep.subr.bf16.mxu1 %v1041_v0  ;;  %v651_v36 = vld [vmem:[%s1294_s6] ss:$0 sm:$0xff]  ;;  %v679_v56 = vld [vmem:[#allocation8] sm:$0xff]  }
  0x89   :  { %v677_v58 = vld [vmem:[%s1297_s9] ss:$0 sm:$0xff]  ;;  %v680_v60 = vunpack.c.l.bf16 %v679_v56  ;;  %v681_v1 = vunpack.c.h.bf16 %v679_v56 }
  0x8b   :  { %725 = vmatpush3.bf16.msra.mxu0 %v818_v7  ;;  %745 = vmatpush3.bf16.msra.mxu1 %v819_v8 }
  0x8c   :  { %726 = vmatprep.subr.bf16.mxu0 %v1041_v0  ;;  %746 = vmatprep.subr.bf16.mxu1 %v1041_v0 }
  0x8f   :  { %727 = vmatpush3.bf16.msra.mxu0 %v820_v9  ;;  %747 = vmatpush3.bf16.msra.mxu1 %v821_v10 }
  0x90   :  { %728 = vmatprep.subr.bf16.mxu0 %v1041_v0  ;;  %748 = vmatprep.subr.bf16.mxu1 %v1041_v0 }
  0x93   :  { %729 = vmatpush3.bf16.msra.mxu0 %v822_v11  ;;  %749 = vmatpush3.bf16.msra.mxu1 %v823_v12 }
  0x94   :  { %730 = vmatprep.subr.bf16.mxu0 %v1041_v0  ;;  %750 = vmatprep.subr.bf16.mxu1 %v1041_v0 }
  0x97   :  { %731 = vmatpush3.bf16.msra.mxu0 %v824_v13  ;;  %751 = vmatpush3.bf16.msra.mxu1 %v825_v14 }
  0x98   :  { %732 = vmatprep.subr.bf16.mxu0 %v1041_v0  ;;  %752 = vmatprep.subr.bf16.mxu1 %v1041_v0 }
  0x9b   :  { %733 = vmatpush3.bf16.msra.mxu0 %v826_v15  ;;  %753 = vmatpush3.bf16.msra.mxu1 %v827_v16 }
  0x9c   :  { %758 = vmatprep.subr.bf16.mxu0 %v1041_v0  ;;  %778 = vmatprep.subr.bf16.mxu1 %v1041_v0 }
  0x9e   :  { %735 = vmatmul.mubr.bf16.vlgmr.msra.gmra.mrb[0].mxu0 %v828_v17  ;;  %755 = vmatmul.mubr.bf16.vlgmr.msra.gmra.mrb[0].mxu1 %v829_v18 }
  0x9f   :  { %759 = vmatpush3.bf16.msra.mxu0 %v831_v19  ;;  %779 = vmatpush3.bf16.msra.mxu1 %v830_v20 }
  0xa0   :  { %760 = vmatprep.subr.bf16.mxu0 %v1041_v0  ;;  %780 = vmatprep.subr.bf16.mxu1 %v1041_v0 }
  0xa1   :  { %794 = vmatprep.mubr.msk.bf16.mxu1 %vm1042_vm0, %v1041_v0  ;;  %774 = vmatprep.mubr.msk.bf16.mxu0 %vm1042_vm0, %v1041_v0 }
  0xa3   :  { %761 = vmatpush3.bf16.msra.mxu0 %v833_v21  ;;  %781 = vmatpush3.bf16.msra.mxu1 %v832_v22 }
  0xa4   :  { %762 = vmatprep.subr.bf16.mxu0 %v1041_v0  ;;  %782 = vmatprep.subr.bf16.mxu1 %v1041_v0 }
  0xa7   :  { %763 = vmatpush3.bf16.msra.mxu0 %v835_v23  ;;  %783 = vmatpush3.bf16.msra.mxu1 %v834_v24 }
  0xa8   :  { %764 = vmatprep.subr.bf16.mxu0 %v1041_v0  ;;  %784 = vmatprep.subr.bf16.mxu1 %v1041_v0 }
  0xab   :  { %765 = vmatpush3.bf16.msra.mxu0 %v837_v25  ;;  %785 = vmatpush3.bf16.msra.mxu1 %v836_v26 }
  0xac   :  { %766 = vmatprep.subr.bf16.mxu0 %v1041_v0  ;;  %786 = vmatprep.subr.bf16.mxu1 %v1041_v0 }
  0xaf   :  { %767 = vmatpush3.bf16.msra.mxu0 %v839_v27  ;;  %787 = vmatpush3.bf16.msra.mxu1 %v838_v28 }
  0xb0   :  { %768 = vmatprep.subr.bf16.mxu0 %v1041_v0  ;;  %788 = vmatprep.subr.bf16.mxu1 %v1041_v0 }
  0xb3   :  { %769 = vmatpush3.bf16.msra.mxu0 %v841_v29  ;;  %789 = vmatpush3.bf16.msra.mxu1 %v840_v30 }
  0xb4   :  { %770 = vmatprep.subr.bf16.mxu0 %v1041_v0  ;;  %790 = vmatprep.subr.bf16.mxu1 %v1041_v0 }
  0xb7   :  { %791 = vmatpush3.bf16.msra.mxu1 %v842_v31  ;;  %771 = vmatpush3.bf16.msra.mxu0 %v843_v32 }
  0xb8   :  { %792 = vmatprep.subr.bf16.mxu1 %v1041_v0  ;;  %772 = vmatprep.subr.bf16.mxu0 %v1041_v0 }
  0xbb   :  { %793 = vmatpush3.bf16.msra.mxu1 %v844_v33  ;;  %773 = vmatpush3.bf16.msra.mxu0 %v845_v34 }
  0xbe   :  { %795 = vmatmul.mubr.bf16.vlgmr.msra.gmra.mrb[4].mxu1 %v828_v17 }
 0x171   :  { %v253_v37 = vpop.f32.mrb[0].mxu0  ;;  %v371_v39 = vpop.f32.mrb[0].mxu1 }
 0x172   :  { %v254_v38 = vadd.f32 %v641_v35, %v253_v37  ;;  %v736_v40 = vpop.f32.mrb[1].mxu0  ;;  %v372_v41 = vadd.f32 %v651_v36, %v371_v39  ;;  %v756_v42 = vpop.f32.mrb[1].mxu1 }
 0x173   :  { %v256_v43 = vpop.f32.mrb[2].mxu0  ;;  %v374_v45 = vpop.f32.mrb[2].mxu1 }
 0x174   :  { %v257_v44 = vadd.f32 %v641_v35, %v256_v43  ;;  %v737_v46 = vpop.f32.mrb[3].mxu0  ;;  %v378_v47 = vmul.f32 %v372_v41, %v254_v38  ;;  %v375_v48 = vadd.f32 %v651_v36, %v374_v45  ;;  %v757_v49 = vpop.f32.mrb[3].mxu1 }
 0x176   :  { %v379_v50 = vmul.f32 %v375_v48, %v257_v44 }
 0x178   :  { %v382_v51 = vpack.c.bf16 %v379_v50, %v378_v47 }
 0x17a   :  { %775 = vmatmul.mubr.bf16.vlgmr.msra.gmra.mrb[4].mxu0 %v382_v51 }
 0x191   :  { %v595_v52 = vpop.f32.mrb[4].mxu1 }
 0x192   :  { %v796_v53 = vpop.f32.mrb[5].mxu1 }
 0x193   :  { %v598_v54 = vpop.f32.mrb[6].mxu1 }
 0x194   :  { %v797_v55 = vpop.f32.mrb[7].mxu1 }
 0x24d   :  { %v481_v57 = vpop.f32.mrb[4].mxu0 }
 0x24e   :  { %v602_v59 = vadd.f32 %v595_v52, %v481_v57  ;;  %v776_v61 = vpop.f32.mrb[5].mxu0 }
 0x24f   :  { %v484_v62 = vpop.f32.mrb[6].mxu0 }
 0x250   :  { %v611_v63 = vadd.f32 %v677_v58, %v602_v59  ;;  %v603_v0 = vadd.f32 %v598_v54, %v484_v62  ;;  %v777_v2 = vpop.f32.mrb[7].mxu0 }
 0x252   :  { %v617_v3 = vadd.f32 %v680_v60, %v611_v63  ;;  %v612_v4 = vadd.f32 %v677_v58, %v603_v0 }
 0x254   :  { %619 = vst [vmem:[#allocation15] sm:$0xff] %v617_v3  ;;  %v618_v5 = vadd.f32 %v681_v1, %v612_v4 }
 0x256   :  { %620 = vst [vmem:[#allocation15 + $0x8] sm:$0xff] %v618_v5 }
 0x257   :  { %1011 = shalt.err (!%p1008_p4)
}
 0x258   :  { %s1012_s14 = scalar_lea.hbm %s1298_s10, 256 }
 0x259   :  { %p1013_p5 = scmp.ne.s32.totalorder %s1298_s10, %s1012_s14  ;;  %p1016_p6 = scmp.lt.u32.totalorder %s1012_s14, %s1298_s10 }
 0x25b   :  { %p1018_p7 = pnand %p1016_p6, %p1013_p5 }
 0x25d   :  { %1021 = shalt.err (!%p1018_p7)
}
 0x25e   :  { %s1044_s2 = smov 128   ;;  %s1045_s23 = smov 8  }
 0x25f   :  { %632 = dma.vmem_to_hbm [thread:$0]  %s627_s17, 256, %s1298_s10, [#allocation5], %s1044_s2, %s1044_s2, %s1045_s23  }
 0x260   :  { %1030 = dma.done.wait [#allocation5], 256  }
 0x261   :  { %1031 = vsyncadd [#allocation5], 4294967040 }
 0x262   :  { %636 = vsyncpa [#allocation4], 1 }
 0x263   :  { %637 = vsyncpa [#allocation7], 1 }
 0x264   :  { %638 = vsyncpa [#allocation10], 1 }
 0x265   :  { %639 = vsyncpa [#allocation13], 1 }
 0x266   :  { %640 = vsyncpa [#allocation5], 1 }

</bundles_post_ra>
